<compile_context>
chip_gen: v5e
topology: v5e:2x2
jax: 0.10.0
libtpu: 0.0.40
codegen_flags: <defaults>
</compile_context>

<pallas_src>
import functools

import jax
import jax.numpy as jnp
from jax import lax
from jax.experimental import pallas as pl
from jax.experimental.pallas import tpu as pltpu


def _bn_fold(gamma, beta, mean, var, eps=1e-5):
    scale = gamma / jnp.sqrt(var + eps)
    shift = beta - mean * scale
    return scale.astype(jnp.float32), shift.astype(jnp.float32)


def _vmem_limit_bytes():
    """Per-generation VMEM budget: ~3/4 of physical VMEM (v7x: 64->48 MiB,
    v5e/v6e: 128->~96 MiB), never below the 32 MiB scoped default."""
    cap = 64 * 1024 * 1024
    try:
        cap = int(pltpu.get_tpu_info().vmem_capacity_bytes)
    except Exception:
        pass
    return max(32 * 1024 * 1024, min(cap * 3 // 4, 100 * 1024 * 1024))


@functools.lru_cache(maxsize=None)
def _buffered_single_ok():
    """Probe whether this jax build accepts pipeline_mode=pl.Buffered(1) on a
    grid-invariant operand of a plain pallas_call; fall back gracefully."""
    if not hasattr(pl, "Buffered"):
        return False

    def _probe(a_ref, o_ref):
        o_ref[...] = a_ref[...] + 1.0

    try:
        spec = pl.BlockSpec((8, 128), lambda i: (0, 0),
                            pipeline_mode=pl.Buffered(1))
        fn = pl.pallas_call(
            _probe,
            out_shape=jax.ShapeDtypeStruct((16, 128), jnp.float32),
            grid_spec=pltpu.PrefetchScalarGridSpec(
                num_scalar_prefetch=0,
                grid=(2,),
                in_specs=[spec],
                out_specs=pl.BlockSpec((8, 128), lambda i: (i, 0))))
        jax.block_until_ready(fn(jnp.zeros((8, 128), jnp.float32)))
        return True
    except Exception:
        return False


def _invariant_spec(shape):
    """BlockSpec for a grid-invariant operand; single-buffered when supported."""
    index_map = lambda b: (0,) * len(shape)
    if _buffered_single_ok():
        return pl.BlockSpec(shape, index_map, pipeline_mode=pl.Buffered(1))
    return pl.BlockSpec(shape, index_map)


def _pick_batch_block(B, max_block=8):
    """Images per grid step: amortizes the ~0.35us per-step pipeline overhead
    while keeping >= 2 grid steps so both v7x TensorCores get work."""
    if B <= 2:
        return 1
    target = min(max_block, B // 2)           # grid length stays >= 2
    for bblk in range(target, 0, -1):
        if B % bblk == 0:
            return bblk
    return 1


# --------------------------------------------------------------------------
# Fast path: stride 1, padding <= (K-1)/2, lane-flattened spatial layout.
# --------------------------------------------------------------------------
def _mbconv6_s1_kernel(x_ref, w1_ref, b1_ref, wdw_ref, col_ref,
                       b2_ref, w3_ref, b3_ref, o_ref,
                       *, K, P, H, W, HW, Bblk, residual, dw_dtype):
    Cmid = w1_ref.shape[0]

    # Halo-mask index planes, hoisted out of the tap loop (iota + VPU compares;
    # no (K*K, HW) f32 mask array DMA'd from HBM).
    idx = lax.broadcasted_iota(jnp.int32, (1, HW), 1)     # flat index h*W + w
    col = col_ref[...]                                    # (1, HW) int32 == idx % W

    w1 = w1_ref[...]                                      # (Cmid, Cin)  BN-folded
    wdw = wdw_ref[...]                                    # (Cmid, K*K)  BN-folded
    w3 = w3_ref[...]                                      # (Cout, Cmid) BN-folded
    b1, b2, b3 = b1_ref[...], b2_ref[...], b3_ref[...]
    zeros = jnp.zeros((Cmid, HW), dw_dtype)               # hoisted (no CSE in loops)

    for bi in range(Bblk):                                # short static batch loop
        x = x_ref[bi]                                     # (Cin, HW)

        # ---- stage 1: 1x1 expand conv (scale folded) + shift + ReLU (MXU) ----
        h1 = jnp.dot(w1, x.astype(w1.dtype),
                     preferred_element_type=jnp.float32)  # (Cmid, HW) f32
        h1 = jnp.maximum(h1 + b1, 0.0).astype(dw_dtype)

        # ---- stage 2: depthwise KxK, stride 1 (XLU rolls + iota halo masks) ----
        parts = [None, None, None]                        # independent partials
        for kh in range(K):
            for kw in range(K):
                t = kh * K + kw
                dh, dw = kh - P, kw - P
                d = dh * W + dw                           # flattened offset
                tap = pltpu.roll(h1, (-d) % HW, axis=1) if d % HW else h1
                tap = tap * wdw[:, t:t + 1]               # per-channel weight
                conds = []
                if dh < 0:
                    conds.append(idx >= (-dh) * W)
                if dh > 0:
                    conds.append(idx < (H - dh) * W)
                if dw < 0:
                    conds.append(col >= -dw)
                if dw > 0:
                    conds.append(col < W - dw)
                if conds:                                 # only taps with a halo
                    ok = functools.reduce(jnp.logical_and, conds)
                    tap = jnp.where(ok, tap, zeros)
                p = t % 3
                parts[p] = tap if parts[p] is None else parts[p] + tap
        acc = functools.reduce(lambda u, v: u + v,
                               [p for p in parts if p is not None])
        h2 = jnp.maximum(acc.astype(jnp.float32) + b2, 0.0)

        # ---- stage 3: 1x1 project conv (scale folded) + shift (+ residual) ----
        out = jnp.dot(w3, h2.astype(w3.dtype),
                      preferred_element_type=jnp.float32)  # (Cout, HW) f32
        out = out + b3
        if residual:
            out = out + x.astype(jnp.float32)
        o_ref[bi] = out.astype(o_ref.dtype)


def _mbconv6_flat_call(x_nchw, params, *, K, P, mxu_dtype, dw_dtype, out_dtype):
    B, Cin, H, W = x_nchw.shape
    HW = H * W
    OH = H + 2 * P - K + 1
    OW = W + 2 * P - K + 1
    w1 = params["w1"].reshape(-1, Cin)                     # (Cmid, Cin)
    Cmid = w1.shape[0]
    wdw = params["wdw"].reshape(Cmid, K * K)               # (Cmid, K*K)
    w3 = params["w3"].reshape(-1, Cmid)                    # (Cout, Cmid)
    Cout = w3.shape[0]
    residual = (Cin == Cout) and (OH == H) and (OW == W)

    # Fold BN scales into the conv weights on the host; keep only the shifts.
    sc1, sh1 = _bn_fold(params["g1"], params["b1"], params["m1"], params["v1"])
    sc2, sh2 = _bn_fold(params["g2"], params["b2"], params["m2"], params["v2"])
    sc3, sh3 = _bn_fold(params["g3"], params["b3"], params["m3"], params["v3"])
    w1_f = (w1 * sc1[:, None]).astype(mxu_dtype)
    wdw_f = (wdw * sc2[:, None]).astype(dw_dtype)
    w3_f = (w3 * sc3[:, None]).astype(mxu_dtype)
    sh1 = sh1.reshape(Cmid, 1)
    sh2 = sh2.reshape(Cmid, 1)
    sh3 = sh3.reshape(Cout, 1)

    # Tiny (1, HW) int32 column-id plane (replaces the (K*K, HW) f32 masks).
    col_ids = (jnp.arange(HW, dtype=jnp.int32) % W).reshape(1, HW)

    Bblk = _pick_batch_block(B)
    grid = (B // Bblk,)

    # NCHW kept end-to-end; flattening H*W onto lanes is a free reshape, and
    # the caller's activation dtype (f32 or bf16) is accepted as-is.
    x_flat = x_nchw.reshape(B, Cin, HW)

    kernel = functools.partial(_mbconv6_s1_kernel, K=K, P=P, H=H, W=W, HW=HW,
                               Bblk=Bblk, residual=residual, dw_dtype=dw_dtype)

    out_flat = pl.pallas_call(
        kernel,
        out_shape=jax.ShapeDtypeStruct((B, Cout, HW), out_dtype),
        grid_spec=pltpu.PrefetchScalarGridSpec(
            num_scalar_prefetch=0,
            grid=grid,
            in_specs=[
                pl.BlockSpec((Bblk, Cin, HW), lambda b: (b, 0, 0)),
                _invariant_spec((Cmid, Cin)),
                _invariant_spec((Cmid, 1)),
                _invariant_spec((Cmid, K * K)),
                _invariant_spec((1, HW)),
                _invariant_spec((Cmid, 1)),
                _invariant_spec((Cout, Cmid)),
                _invariant_spec((Cout, 1)),
            ],
            out_specs=pl.BlockSpec((Bblk, Cout, HW), lambda b: (b, 0, 0)),
        ),
        compiler_params=pltpu.CompilerParams(
            dimension_semantics=("parallel",),
            vmem_limit_bytes=_vmem_limit_bytes()),
    )(x_flat, w1_f, sh1, wdw_f, col_ids, sh2, w3_f, sh3)

    out = out_flat.reshape(B, Cout, H, W)
    if OH != H or OW != W:
        # padding < 'same': the stride-1 full grid was computed; crop is free.
        out = out[:, :, :OH, :OW]
    return out


# --------------------------------------------------------------------------
# General fallback: stride > 1 / exotic padding (NHWC inside the kernel).
# --------------------------------------------------------------------------
def _mbconv6_general_kernel(x_ref, w1_ref, b1_ref, wdw_ref, b2_ref,
                            w3_ref, b3_ref, o_ref, pad_ref,
                            *, K, S, P, OH, OW, residual):
    x = x_ref[0]                                  # (H, W, Cin) f32
    H, W, Cin = x.shape
    Cmid = w1_ref.shape[1]
    Cout = w3_ref.shape[1]

    # ---- stage 1: 1x1 expand conv (scale folded) + shift + ReLU ----
    h1 = jnp.dot(x.reshape(H * W, Cin).astype(w1_ref.dtype), w1_ref[...],
                 preferred_element_type=jnp.float32)
    h1 = jnp.maximum(h1 + b1_ref[...], 0.0).reshape(H, W, Cmid)

    # ---- stage 2: depthwise KxK conv (zero-padded) + shift + ReLU ----
    # Only the halo strips are zeroed; the interior is overwritten each step.
    if P > 0:
        Wp = W + 2 * P
        pad_ref[:P, :, :] = jnp.zeros((P, Wp, Cmid), jnp.float32)
        pad_ref[P + H:, :, :] = jnp.zeros((P, Wp, Cmid), jnp.float32)
        pad_ref[P:P + H, :P, :] = jnp.zeros((H, P, Cmid), jnp.float32)
        pad_ref[P:P + H, P + W:, :] = jnp.zeros((H, P, Cmid), jnp.float32)
    pad_ref[P:P + H, P:P + W, :] = h1
    padded = pad_ref[...]                         # (H+2P, W+2P, Cmid)

    parts = [None, None]
    for kh in range(K):                           # static unrolled taps
        for kw in range(K):
            tap = lax.slice(
                padded,
                (kh, kw, 0),
                (kh + (OH - 1) * S + 1, kw + (OW - 1) * S + 1, Cmid),
                (S, S, 1))
            tap = tap * wdw_ref[kh, kw, :]
            i = (kh * K + kw) % 2
            parts[i] = tap if parts[i] is None else parts[i] + tap
    acc = parts[0] if parts[1] is None else parts[0] + parts[1]
    h2 = jnp.maximum(acc + b2_ref[0], 0.0)

    # ---- stage 3: 1x1 project conv (scale folded) + shift (+ residual) ----
    out = jnp.dot(h2.reshape(OH * OW, Cmid).astype(w3_ref.dtype), w3_ref[...],
                  preferred_element_type=jnp.float32)
    out = (out + b3_ref[...]).reshape(OH, OW, Cout)
    if residual:
        out = out + x
    o_ref[0] = out.astype(o_ref.dtype)


def _mbconv6_nhwc_call(x_nchw, params, *, K, S, P, mxu_dtype):
    B, Cin, H, W = x_nchw.shape
    w1, wdw, w3 = params["w1"], params["wdw"], params["w3"]
    Cmid, Cout = w1.shape[0], w3.shape[0]
    OH = (H + 2 * P - K) // S + 1
    OW = (W + 2 * P - K) // S + 1
    residual = (Cin == Cout) and (OH == H) and (OW == W)

    sc1, sh1 = _bn_fold(params["g1"], params["b1"], params["m1"], params["v1"])
    sc2, sh2 = _bn_fold(params["g2"], params["b2"], params["m2"], params["v2"])
    sc3, sh3 = _bn_fold(params["g3"], params["b3"], params["m3"], params["v3"])
    w1_k = jnp.transpose(w1.reshape(Cmid, Cin) * sc1[:, None], (1, 0)).astype(mxu_dtype)
    wdw_k = jnp.transpose(
        (wdw.reshape(Cmid, K * K) * sc2[:, None]).reshape(Cmid, K, K),
        (1, 2, 0)).astype(jnp.float32)
    w3_k = jnp.transpose(w3.reshape(Cout, Cmid) * sc3[:, None], (1, 0)).astype(mxu_dtype)
    sh1 = sh1.reshape(1, Cmid)
    sh2 = sh2.reshape(1, Cmid)
    sh3 = sh3.reshape(1, Cout)

    # TODO(synk): NHWC is lane-sparse for small C and keeps two NCHW<->NHWC HBM
    #             passes; restructure channels-major (or require C>=128) and
    #             drop the padded scratch before using this path at scale.
    x = jnp.transpose(x_nchw, (0, 2, 3, 1)).astype(jnp.float32)

    kernel = functools.partial(_mbconv6_general_kernel, K=K, S=S, P=P,
                               OH=OH, OW=OW, residual=residual)
    out_nhwc = pl.pallas_call(
        kernel,
        out_shape=jax.ShapeDtypeStruct((B, OH, OW, Cout), jnp.float32),
        grid_spec=pltpu.PrefetchScalarGridSpec(
            num_scalar_prefetch=0,
            grid=(B,),
            in_specs=[
                pl.BlockSpec((1, H, W, Cin), lambda b: (b, 0, 0, 0)),
                _invariant_spec((Cin, Cmid)),
                _invariant_spec((1, Cmid)),
                _invariant_spec((K, K, Cmid)),
                _invariant_spec((1, Cmid)),
                _invariant_spec((Cmid, Cout)),
                _invariant_spec((1, Cout)),
            ],
            out_specs=pl.BlockSpec((1, OH, OW, Cout), lambda b: (b, 0, 0, 0)),
            scratch_shapes=[
                pltpu.VMEM((H + 2 * P, W + 2 * P, Cmid), jnp.float32),
            ],
        ),
        compiler_params=pltpu.CompilerParams(
            dimension_semantics=("parallel",),
            vmem_limit_bytes=_vmem_limit_bytes()),
    )(x, w1_k, sh1, wdw_k, sh2, w3_k, sh3)

    return jnp.transpose(out_nhwc, (0, 3, 1, 2))  # back to NCHW


def mbconv6_pallas(x_nchw, params, *, kernel_size, stride, padding,
                   mxu_dtype=jnp.bfloat16, dw_dtype=jnp.float32, out_dtype=None):
    """Forward pass of MBConv6. x_nchw: (B, Cin, H, W) (PyTorch layout).

    mxu_dtype: operand dtype of the two 1x1 convs (bf16 default; f32 for tight
               numerics).
    dw_dtype : depthwise tap-math dtype (bf16 recommended on v6e/v7x, f32 on
               v5e; default f32).
    out_dtype: activation output dtype; defaults to the input dtype.
    """
    B, Cin, H, W = x_nchw.shape
    K, S, P = kernel_size, stride, padding
    OH = (H + 2 * P - K) // S + 1
    OW = (W + 2 * P - K) // S + 1
    out_dtype = x_nchw.dtype if out_dtype is None else out_dtype
    # Lane-dense fast path: stride 1 with padding <= (K-1)/2 (covers both the
    # 'same' residual config and the module-default padding=0).
    if S == 1 and 1 <= OH <= H and 1 <= OW <= W:
        return _mbconv6_flat_call(x_nchw, params, K=K, P=P, mxu_dtype=mxu_dtype,
                                  dw_dtype=dw_dtype, out_dtype=out_dtype)
    return _mbconv6_nhwc_call(x_nchw, params, K=K, S=S, P=P, mxu_dtype=mxu_dtype)


# --------------------------------------------------------------------------
# Pure-JAX reference + parameter construction.
# --------------------------------------------------------------------------
def mbconv6_ref(x, params, *, kernel_size, stride, padding):
    """Pure-JAX reference (NCHW, matches PyTorch eval-mode forward)."""
    eps = 1e-5

    def bn(y, g, b, m, v):
        g, b, m, v = (t[None, :, None, None] for t in (g, b, m, v))
        return (y - m) / jnp.sqrt(v + eps) * g + b

    Cmid = params["w1"].shape[0]
    dn = ("NCHW", "OIHW", "NCHW")
    h = lax.conv_general_dilated(x, params["w1"], (1, 1), "VALID",
                                 dimension_numbers=dn)
    h = jax.nn.relu(bn(h, params["g1"], params["b1"], params["m1"], params["v1"]))
    h = lax.conv_general_dilated(h, params["wdw"], (stride, stride),
                                 [(padding, padding), (padding, padding)],
                                 dimension_numbers=dn,
                                 feature_group_count=Cmid)
    h = jax.nn.relu(bn(h, params["g2"], params["b2"], params["m2"], params["v2"]))
    out = lax.conv_general_dilated(h, params["w3"], (1, 1), "VALID",
                                   dimension_numbers=dn)
    out = bn(out, params["g3"], params["b3"], params["m3"], params["v3"])
    if x.shape == out.shape:
        out = out + x
    return out


def make_params(key, in_channels, out_channels, kernel_size, expand_ratio=6):
    Cmid = round(expand_ratio * in_channels)
    ks = jax.random.split(key, 12)
    return {
        "w1": 0.1 * jax.random.normal(ks[0], (Cmid, in_channels, 1, 1), jnp.float32),
        "wdw": 0.1 * jax.random.normal(ks[1], (Cmid, 1, kernel_size, kernel_size), jnp.float32),
        "w3": 0.1 * jax.random.normal(ks[2], (out_channels, Cmid, 1, 1), jnp.float32),
        "g1": jax.random.uniform(ks[3], (Cmid,), jnp.float32, 0.5, 1.5),
        "b1": 0.1 * jax.random.normal(ks[4], (Cmid,), jnp.float32),
        "m1": 0.1 * jax.random.normal(ks[5], (Cmid,), jnp.float32),
        "v1": jax.random.uniform(ks[6], (Cmid,), jnp.float32, 0.5, 1.5),
        "g2": jax.random.uniform(ks[7], (Cmid,), jnp.float32, 0.5, 1.5),
        "b2": 0.1 * jax.random.normal(ks[8], (Cmid,), jnp.float32),
        "m2": 0.1 * jax.random.normal(ks[9], (Cmid,), jnp.float32),
        "v2": jax.random.uniform(ks[10], (Cmid,), jnp.float32, 0.5, 1.5),
        "g3": jnp.linspace(0.8, 1.2, out_channels, dtype=jnp.float32),
        "b3": jnp.linspace(-0.1, 0.1, out_channels, dtype=jnp.float32),
        "m3": jnp.linspace(-0.05, 0.05, out_channels, dtype=jnp.float32),
        "v3": jnp.linspace(0.9, 1.1, out_channels, dtype=jnp.float32),
    }


if __name__ == "__main__":
    B, Cin, Cout, H, W = 2, 4, 4, 16, 16
    K, S = 3, 1

    key = jax.random.PRNGKey(0)
    kx, kp = jax.random.split(key)
    x = jax.random.normal(kx, (B, Cin, H, W), jnp.float32)   # NCHW like PyTorch
    params = make_params(kp, Cin, Cout, K)

    # ---- stride 1, 'same' padding (residual config) ----
    ref1 = mbconv6_ref(x, params, kernel_size=K, stride=S, padding=1)

    # bf16 MXU operands, f32 depthwise taps -> loose tolerance.
    out_bf = mbconv6_pallas(x, params, kernel_size=K, stride=S, padding=1)
    out_bf = jax.block_until_ready(out_bf)
    assert out_bf.shape == ref1.shape, (out_bf.shape, ref1.shape)
    assert jnp.allclose(out_bf, ref1, atol=2e-2, rtol=2e-2), float(
        jnp.max(jnp.abs(out_bf - ref1)))

    # Full f32 -> tight tolerance.
    out_f32 = mbconv6_pallas(x, params, kernel_size=K, stride=S, padding=1,
                             mxu_dtype=jnp.float32)
    out_f32 = jax.block_until_ready(out_f32)
    assert jnp.allclose(out_f32, ref1, atol=1e-4, rtol=1e-4), float(
        jnp.max(jnp.abs(out_f32 - ref1)))

    # bf16 MXU + bf16 depthwise taps (v6e/v7x config) -> loosest tolerance.
    out_allbf = mbconv6_pallas(x, params, kernel_size=K, stride=S, padding=1,
                               mxu_dtype=jnp.bfloat16, dw_dtype=jnp.bfloat16)
    out_allbf = jax.block_until_ready(out_allbf)
    assert jnp.allclose(out_allbf, ref1, atol=5e-2, rtol=5e-2), float(
        jnp.max(jnp.abs(out_allbf - ref1)))

    # ---- module-default padding=0 (valid conv, no residual): fast path + crop ----
    ref0 = mbconv6_ref(x, params, kernel_size=K, stride=S, padding=0)
    out0 = mbconv6_pallas(x, params, kernel_size=K, stride=S, padding=0,
                          mxu_dtype=jnp.float32)
    out0 = jax.block_until_ready(out0)
    assert out0.shape == ref0.shape, (out0.shape, ref0.shape)
    assert jnp.allclose(out0, ref0, atol=1e-4, rtol=1e-4), float(
        jnp.max(jnp.abs(out0 - ref0)))

    # ---- general NHWC fallback (normally only used for stride>1 / exotic
    #      padding): exercised directly at a known-good config ----
    out_g = _mbconv6_nhwc_call(x, params, K=K, S=S, P=0, mxu_dtype=jnp.float32)
    out_g = jax.block_until_ready(out_g)
    assert out_g.shape == ref0.shape, (out_g.shape, ref0.shape)
    assert jnp.allclose(out_g, ref0, atol=1e-4, rtol=1e-4), float(
        jnp.max(jnp.abs(out_g - ref0)))

    print("KERNEL_OK")
</pallas_src>

<mosaic_0001>
module attributes {stable_mosaic.version = 11 : i64} {
  func.func @_probe(%arg0: i32, %arg1: memref<8x128xf32, #tpu.memory_space<vmem>>, %arg2: memref<8x128xf32, #tpu.memory_space<vmem>>) attributes {dimension_semantics = [#tpu.dimension_semantics<arbitrary>], iteration_bounds = array<i64: 2>, scalar_prefetch = 0 : i64, scratch_operands = 0 : i64, tpu.core_type = #tpu.core_type<tc>, window_params = [{pipeline_mode = #tpu.pipeline_mode<synchronous>, transform_indices = @transform_0, window_bounds = array<i64: 8, 128>}, {transform_indices = @transform_1, window_bounds = array<i64: 8, 128>}]} {
    %c0 = arith.constant 0 : index
    %c0_0 = arith.constant 0 : index
    %0 = vector.load %arg1[%c0, %c0_0] : memref<8x128xf32, #tpu.memory_space<vmem>>, vector<8x128xf32>
    %cst = arith.constant 1.000000e+00 : f32
    %1 = vector.broadcast %cst : f32 to vector<8x128xf32>
    %2 = arith.addf %0, %1 : vector<8x128xf32>
    %c0_1 = arith.constant 0 : index
    %c0_2 = arith.constant 0 : index
    %3 = vector.load %arg2[%c0_1, %c0_2] : memref<8x128xf32, #tpu.memory_space<vmem>>, vector<8x128xf32>
    tpu.vector_store %arg2[%c0_1, %c0_2], %2 {strides = array<i32>} : memref<8x128xf32, #tpu.memory_space<vmem>>, vector<8x128xf32>,
    return
  }
  func.func @transform_0(%arg0: i32) -> (i32, i32) {
    %c0_i32 = arith.constant 0 : i32
    %c0_i32_0 = arith.constant 0 : i32
    %c0_i32_1 = arith.constant 0 : i32
    return %c0_i32, %c0_i32_0 : i32, i32
  }
  func.func @transform_1(%arg0: i32) -> (i32, i32) {
    %c0_i32 = arith.constant 0 : i32
    %c0_i32_0 = arith.constant 0 : i32
    return %arg0, %c0_i32 : i32, i32
  }
}

module attributes {stable_mosaic.version = 11 : i64} {
  func.func @_mbconv6_s1_kernel(%arg0: i32, %arg1: memref<1x4x256xf32, #tpu.memory_space<vmem>>, %arg2: memref<24x4xbf16, #tpu.memory_space<vmem>>, %arg3: memref<24x1xf32, #tpu.memory_space<vmem>>, %arg4: memref<24x9xf32, #tpu.memory_space<vmem>>, %arg5: memref<1x256xi32, #tpu.memory_space<vmem>>, %arg6: memref<24x1xf32, #tpu.memory_space<vmem>>, %arg7: memref<4x24xbf16, #tpu.memory_space<vmem>>, %arg8: memref<4x1xf32, #tpu.memory_space<vmem>>, %arg9: memref<1x4x256xf32, #tpu.memory_space<vmem>>) attributes {dimension_semantics = [#tpu.dimension_semantics<parallel>], iteration_bounds = array<i64: 2>, scalar_prefetch = 0 : i64, scratch_operands = 0 : i64, tpu.core_type = #tpu.core_type<tc>, window_params = [{transform_indices = @transform_0, window_bounds = array<i64: 1, 4, 256>}, {pipeline_mode = #tpu.pipeline_mode<synchronous>, transform_indices = @transform_1, window_bounds = array<i64: 24, 4>}, {pipeline_mode = #tpu.pipeline_mode<synchronous>, transform_indices = @transform_2, window_bounds = array<i64: 24, 1>}, {pipeline_mode = #tpu.pipeline_mode<synchronous>, transform_indices = @transform_3, window_bounds = array<i64: 24, 9>}, {pipeline_mode = #tpu.pipeline_mode<synchronous>, transform_indices = @transform_4, window_bounds = array<i64: 1, 256>}, {pipeline_mode = #tpu.pipeline_mode<synchronous>, transform_indices = @transform_5, window_bounds = array<i64: 24, 1>}, {pipeline_mode = #tpu.pipeline_mode<synchronous>, transform_indices = @transform_6, window_bounds = array<i64: 4, 24>}, {pipeline_mode = #tpu.pipeline_mode<synchronous>, transform_indices = @transform_7, window_bounds = array<i64: 4, 1>}, {transform_indices = @transform_8, window_bounds = array<i64: 1, 4, 256>}]} {
    %0 = tpu.iota {dimensions = array<i32: 1>} : vector<1x256xi32>
    %c0 = arith.constant 0 : index
    %c0_0 = arith.constant 0 : index
    %1 = vector.load %arg5[%c0, %c0_0] : memref<1x256xi32, #tpu.memory_space<vmem>>, vector<1x256xi32>
    %c0_1 = arith.constant 0 : index
    %c0_2 = arith.constant 0 : index
    %2 = vector.load %arg2[%c0_1, %c0_2] : memref<24x4xbf16, #tpu.memory_space<vmem>>, vector<24x4xbf16>
    %c0_3 = arith.constant 0 : index
    %c0_4 = arith.constant 0 : index
    %3 = vector.load %arg4[%c0_3, %c0_4] : memref<24x9xf32, #tpu.memory_space<vmem>>, vector<24x9xf32>
    %c0_5 = arith.constant 0 : index
    %c0_6 = arith.constant 0 : index
    %4 = vector.load %arg7[%c0_5, %c0_6] : memref<4x24xbf16, #tpu.memory_space<vmem>>, vector<4x24xbf16>
    %c0_7 = arith.constant 0 : index
    %c0_8 = arith.constant 0 : index
    %5 = vector.load %arg3[%c0_7, %c0_8] : memref<24x1xf32, #tpu.memory_space<vmem>>, vector<24x1xf32>
    %c0_9 = arith.constant 0 : index
    %c0_10 = arith.constant 0 : index
    %6 = vector.load %arg6[%c0_9, %c0_10] : memref<24x1xf32, #tpu.memory_space<vmem>>, vector<24x1xf32>
    %c0_11 = arith.constant 0 : index
    %c0_12 = arith.constant 0 : index
    %7 = vector.load %arg8[%c0_11, %c0_12] : memref<4x1xf32, #tpu.memory_space<vmem>>, vector<4x1xf32>
    %cst = arith.constant 0.000000e+00 : f32
    %8 = vector.broadcast %cst : f32 to vector<24x256xf32>
    %c0_13 = arith.constant 0 : index
    %c0_14 = arith.constant 0 : index
    %c0_15 = arith.constant 0 : index
    %9 = vector.load %arg1[%c0_13, %c0_14, %c0_15] : memref<1x4x256xf32, #tpu.memory_space<vmem>>, vector<1x4x256xf32>
    %10 = vector.shape_cast %9 : vector<1x4x256xf32> to vector<4x256xf32>
    %11 = arith.truncf %10 : vector<4x256xf32> to vector<4x256xbf16>
    %cst_16 = arith.constant dense<0.000000e+00> : vector<24x256xf32>
    %12 = tpu.matmul %2, %11, %cst_16 {dimension_numbers = #tpu.dot_dimension_numbers<[1], [0], [0], [1], [0, 0, 1, 1], [], []>} : vector<24x4xbf16>, vector<4x256xbf16>, vector<24x256xf32> -> vector<24x256xf32>
    %13 = vector.broadcast %5 : vector<24x1xf32> to vector<24x256xf32>
    %14 = arith.addf %12, %13 : vector<24x256xf32>
    %cst_17 = arith.constant 0.000000e+00 : f32
    %15 = vector.broadcast %cst_17 : f32 to vector<24x256xf32>
    %16 = arith.maximumf %14, %15 : vector<24x256xf32>
    %c17_i32 = arith.constant 17 : i32
    %17 = tpu.dynamic_rotate %16 by %c17_i32 dim 1 : vector<24x256xf32>, i32 -> vector<24x256xf32>
    %18 = vector.extract_strided_slice %3 {offsets = [0, 0], sizes = [24, 1], strides = [1, 1]} : vector<24x9xf32> to vector<24x1xf32>
    %19 = vector.broadcast %18 : vector<24x1xf32> to vector<24x256xf32>
    %20 = arith.mulf %17, %19 : vector<24x256xf32>
    %c16_i32 = arith.constant 16 : i32
    %21 = vector.broadcast %c16_i32 : i32 to vector<1x256xi32>
    %22 = arith.cmpi sge, %0, %21 : vector<1x256xi32>
    %c1_i32 = arith.constant 1 : i32
    %23 = vector.broadcast %c1_i32 : i32 to vector<1x256xi32>
    %24 = arith.cmpi sge, %1, %23 : vector<1x256xi32>
    %25 = arith.andi %22, %24 : vector<1x256xi1>
    %26 = vector.shape_cast %25 : vector<1x256xi1> to vector<1x256xi1>
    %27 = vector.broadcast %26 : vector<1x256xi1> to vector<24x256xi1>
    %28 = arith.select %27, %20, %8 : vector<24x256xi1>, vector<24x256xf32>
    %c16_i32_18 = arith.constant 16 : i32
    %29 = tpu.dynamic_rotate %16 by %c16_i32_18 dim 1 : vector<24x256xf32>, i32 -> vector<24x256xf32>
    %30 = vector.extract_strided_slice %3 {offsets = [0, 1], sizes = [24, 1], strides = [1, 1]} : vector<24x9xf32> to vector<24x1xf32>
    %31 = vector.broadcast %30 : vector<24x1xf32> to vector<24x256xf32>
    %32 = arith.mulf %29, %31 : vector<24x256xf32>
    %c16_i32_19 = arith.constant 16 : i32
    %33 = vector.broadcast %c16_i32_19 : i32 to vector<1x256xi32>
    %34 = arith.cmpi sge, %0, %33 : vector<1x256xi32>
    %35 = vector.shape_cast %34 : vector<1x256xi1> to vector<1x256xi1>
    %36 = vector.broadcast %35 : vector<1x256xi1> to vector<24x256xi1>
    %37 = arith.select %36, %32, %8 : vector<24x256xi1>, vector<24x256xf32>
    %c15_i32 = arith.constant 15 : i32
    %38 = tpu.dynamic_rotate %16 by %c15_i32 dim 1 : vector<24x256xf32>, i32 -> vector<24x256xf32>
    %39 = vector.extract_strided_slice %3 {offsets = [0, 2], sizes = [24, 1], strides = [1, 1]} : vector<24x9xf32> to vector<24x1xf32>
    %40 = vector.broadcast %39 : vector<24x1xf32> to vector<24x256xf32>
    %41 = arith.mulf %38, %40 : vector<24x256xf32>
    %c16_i32_20 = arith.constant 16 : i32
    %42 = vector.broadcast %c16_i32_20 : i32 to vector<1x256xi32>
    %43 = arith.cmpi sge, %0, %42 : vector<1x256xi32>
    %c15_i32_21 = arith.constant 15 : i32
    %44 = vector.broadcast %c15_i32_21 : i32 to vector<1x256xi32>
    %45 = arith.cmpi slt, %1, %44 : vector<1x256xi32>
    %46 = arith.andi %43, %45 : vector<1x256xi1>
    %47 = vector.shape_cast %46 : vector<1x256xi1> to vector<1x256xi1>
    %48 = vector.broadcast %47 : vector<1x256xi1> to vector<24x256xi1>
    %49 = arith.select %48, %41, %8 : vector<24x256xi1>, vector<24x256xf32>
    %c1_i32_22 = arith.constant 1 : i32
    %50 = tpu.dynamic_rotate %16 by %c1_i32_22 dim 1 : vector<24x256xf32>, i32 -> vector<24x256xf32>
    %51 = vector.extract_strided_slice %3 {offsets = [0, 3], sizes = [24, 1], strides = [1, 1]} : vector<24x9xf32> to vector<24x1xf32>
    %52 = vector.broadcast %51 : vector<24x1xf32> to vector<24x256xf32>
    %53 = arith.mulf %50, %52 : vector<24x256xf32>
    %c1_i32_23 = arith.constant 1 : i32
    %54 = vector.broadcast %c1_i32_23 : i32 to vector<1x256xi32>
    %55 = arith.cmpi sge, %1, %54 : vector<1x256xi32>
    %56 = vector.shape_cast %55 : vector<1x256xi1> to vector<1x256xi1>
    %57 = vector.broadcast %56 : vector<1x256xi1> to vector<24x256xi1>
    %58 = arith.select %57, %53, %8 : vector<24x256xi1>, vector<24x256xf32>
    %59 = arith.addf %28, %58 : vector<24x256xf32>
    %60 = vector.extract_strided_slice %3 {offsets = [0, 4], sizes = [24, 1], strides = [1, 1]} : vector<24x9xf32> to vector<24x1xf32>
    %61 = vector.broadcast %60 : vector<24x1xf32> to vector<24x256xf32>
    %62 = arith.mulf %16, %61 : vector<24x256xf32>
    %63 = arith.addf %37, %62 : vector<24x256xf32>
    %c255_i32 = arith.constant 255 : i32
    %64 = tpu.dynamic_rotate %16 by %c255_i32 dim 1 : vector<24x256xf32>, i32 -> vector<24x256xf32>
    %65 = vector.extract_strided_slice %3 {offsets = [0, 5], sizes = [24, 1], strides = [1, 1]} : vector<24x9xf32> to vector<24x1xf32>
    %66 = vector.broadcast %65 : vector<24x1xf32> to vector<24x256xf32>
    %67 = arith.mulf %64, %66 : vector<24x256xf32>
    %c15_i32_24 = arith.constant 15 : i32
    %68 = vector.broadcast %c15_i32_24 : i32 to vector<1x256xi32>
    %69 = arith.cmpi slt, %1, %68 : vector<1x256xi32>
    %70 = vector.shape_cast %69 : vector<1x256xi1> to vector<1x256xi1>
    %71 = vector.broadcast %70 : vector<1x256xi1> to vector<24x256xi1>
    %72 = arith.select %71, %67, %8 : vector<24x256xi1>, vector<24x256xf32>
    %73 = arith.addf %49, %72 : vector<24x256xf32>
    %c241_i32 = arith.constant 241 : i32
    %74 = tpu.dynamic_rotate %16 by %c241_i32 dim 1 : vector<24x256xf32>, i32 -> vector<24x256xf32>
    %75 = vector.extract_strided_slice %3 {offsets = [0, 6], sizes = [24, 1], strides = [1, 1]} : vector<24x9xf32> to vector<24x1xf32>
    %76 = vector.broadcast %75 : vector<24x1xf32> to vector<24x256xf32>
    %77 = arith.mulf %74, %76 : vector<24x256xf32>
    %c240_i32 = arith.constant 240 : i32
    %78 = vector.broadcast %c240_i32 : i32 to vector<1x256xi32>
    %79 = arith.cmpi slt, %0, %78 : vector<1x256xi32>
    %c1_i32_25 = arith.constant 1 : i32
    %80 = vector.broadcast %c1_i32_25 : i32 to vector<1x256xi32>
    %81 = arith.cmpi sge, %1, %80 : vector<1x256xi32>
    %82 = arith.andi %79, %81 : vector<1x256xi1>
    %83 = vector.shape_cast %82 : vector<1x256xi1> to vector<1x256xi1>
    %84 = vector.broadcast %83 : vector<1x256xi1> to vector<24x256xi1>
    %85 = arith.select %84, %77, %8 : vector<24x256xi1>, vector<24x256xf32>
    %86 = arith.addf %59, %85 : vector<24x256xf32>
    %c240_i32_26 = arith.constant 240 : i32
    %87 = tpu.dynamic_rotate %16 by %c240_i32_26 dim 1 : vector<24x256xf32>, i32 -> vector<24x256xf32>
    %88 = vector.extract_strided_slice %3 {offsets = [0, 7], sizes = [24, 1], strides = [1, 1]} : vector<24x9xf32> to vector<24x1xf32>
    %89 = vector.broadcast %88 : vector<24x1xf32> to vector<24x256xf32>
    %90 = arith.mulf %87, %89 : vector<24x256xf32>
    %c240_i32_27 = arith.constant 240 : i32
    %91 = vector.broadcast %c240_i32_27 : i32 to vector<1x256xi32>
    %92 = arith.cmpi slt, %0, %91 : vector<1x256xi32>
    %93 = vector.shape_cast %92 : vector<1x256xi1> to vector<1x256xi1>
    %94 = vector.broadcast %93 : vector<1x256xi1> to vector<24x256xi1>
    %95 = arith.select %94, %90, %8 : vector<24x256xi1>, vector<24x256xf32>
    %96 = arith.addf %63, %95 : vector<24x256xf32>
    %c239_i32 = arith.constant 239 : i32
    %97 = tpu.dynamic_rotate %16 by %c239_i32 dim 1 : vector<24x256xf32>, i32 -> vector<24x256xf32>
    %98 = vector.extract_strided_slice %3 {offsets = [0, 8], sizes = [24, 1], strides = [1, 1]} : vector<24x9xf32> to vector<24x1xf32>
    %99 = vector.broadcast %98 : vector<24x1xf32> to vector<24x256xf32>
    %100 = arith.mulf %97, %99 : vector<24x256xf32>
    %c240_i32_28 = arith.constant 240 : i32
    %101 = vector.broadcast %c240_i32_28 : i32 to vector<1x256xi32>
    %102 = arith.cmpi slt, %0, %101 : vector<1x256xi32>
    %c15_i32_29 = arith.constant 15 : i32
    %103 = vector.broadcast %c15_i32_29 : i32 to vector<1x256xi32>
    %104 = arith.cmpi slt, %1, %103 : vector<1x256xi32>
    %105 = arith.andi %102, %104 : vector<1x256xi1>
    %106 = vector.shape_cast %105 : vector<1x256xi1> to vector<1x256xi1>
    %107 = vector.broadcast %106 : vector<1x256xi1> to vector<24x256xi1>
    %108 = arith.select %107, %100, %8 : vector<24x256xi1>, vector<24x256xf32>
    %109 = arith.addf %73, %108 : vector<24x256xf32>
    %110 = arith.addf %86, %96 : vector<24x256xf32>
    %111 = arith.addf %110, %109 : vector<24x256xf32>
    %112 = vector.broadcast %6 : vector<24x1xf32> to vector<24x256xf32>
    %113 = arith.addf %111, %112 : vector<24x256xf32>
    %cst_30 = arith.constant 0.000000e+00 : f32
    %114 = vector.broadcast %cst_30 : f32 to vector<24x256xf32>
    %115 = arith.maximumf %113, %114 : vector<24x256xf32>
    %116 = arith.truncf %115 : vector<24x256xf32> to vector<24x256xbf16>
    %cst_31 = arith.constant dense<0.000000e+00> : vector<4x256xf32>
    %117 = tpu.matmul %4, %116, %cst_31 {dimension_numbers = #tpu.dot_dimension_numbers<[1], [0], [0], [1], [0, 0, 1, 1], [], []>} : vector<4x24xbf16>, vector<24x256xbf16>, vector<4x256xf32> -> vector<4x256xf32>
    %118 = vector.broadcast %7 : vector<4x1xf32> to vector<4x256xf32>
    %119 = arith.addf %117, %118 : vector<4x256xf32>
    %120 = arith.addf %119, %10 : vector<4x256xf32>
    %c0_32 = arith.constant 0 : index
    %c0_33 = arith.constant 0 : index
    %c0_34 = arith.constant 0 : index
    %121 = vector.load %arg9[%c0_32, %c0_33, %c0_34] : memref<1x4x256xf32, #tpu.memory_space<vmem>>, vector<1x4x256xf32>
    %122 = vector.shape_cast %121 : vector<1x4x256xf32> to vector<4x256xf32>
    %123 = vector.shape_cast %120 : vector<4x256xf32> to vector<1x4x256xf32>
    tpu.vector_store %arg9[%c0_32, %c0_33, %c0_34], %123 {strides = array<i32>} : memref<1x4x256xf32, #tpu.memory_space<vmem>>, vector<1x4x256xf32>,
    return
  }
  func.func @transform_0(%arg0: i32) -> (i32, i32, i32) {
    %c0_i32 = arith.constant 0 : i32
    %c0_i32_0 = arith.constant 0 : i32
    %c0_i32_1 = arith.constant 0 : i32
    return %arg0, %c0_i32, %c0_i32_0 : i32, i32, i32
  }
  func.func @transform_1(%arg0: i32) -> (i32, i32) {
    %c0_i32 = arith.constant 0 : i32
    %c0_i32_0 = arith.constant 0 : i32
    %c0_i32_1 = arith.constant 0 : i32
    return %c0_i32, %c0_i32_0 : i32, i32
  }
  func.func @transform_2(%arg0: i32) -> (i32, i32) {
    %c0_i32 = arith.constant 0 : i32
    %c0_i32_0 = arith.constant 0 : i32
    %c0_i32_1 = arith.constant 0 : i32
    return %c0_i32, %c0_i32_0 : i32, i32
  }
  func.func @transform_3(%arg0: i32) -> (i32, i32) {
    %c0_i32 = arith.constant 0 : i32
    %c0_i32_0 = arith.constant 0 : i32
    %c0_i32_1 = arith.constant 0 : i32
    return %c0_i32, %c0_i32_0 : i32, i32
  }
  func.func @transform_4(%arg0: i32) -> (i32, i32) {
    %c0_i32 = arith.constant 0 : i32
    %c0_i32_0 = arith.constant 0 : i32
    %c0_i32_1 = arith.constant 0 : i32
    return %c0_i32, %c0_i32_0 : i32, i32
  }
  func.func @transform_5(%arg0: i32) -> (i32, i32) {
    %c0_i32 = arith.constant 0 : i32
    %c0_i32_0 = arith.constant 0 : i32
    %c0_i32_1 = arith.constant 0 : i32
    return %c0_i32, %c0_i32_0 : i32, i32
  }
  func.func @transform_6(%arg0: i32) -> (i32, i32) {
    %c0_i32 = arith.constant 0 : i32
    %c0_i32_0 = arith.constant 0 : i32
    %c0_i32_1 = arith.constant 0 : i32
    return %c0_i32, %c0_i32_0 : i32, i32
  }
  func.func @transform_7(%arg0: i32) -> (i32, i32) {
    %c0_i32 = arith.constant 0 : i32
    %c0_i32_0 = arith.constant 0 : i32
    %c0_i32_1 = arith.constant 0 : i32
    return %c0_i32, %c0_i32_0 : i32, i32
  }
  func.func @transform_8(%arg0: i32) -> (i32, i32, i32) {
    %c0_i32 = arith.constant 0 : i32
    %c0_i32_0 = arith.constant 0 : i32
    %c0_i32_1 = arith.constant 0 : i32
    return %arg0, %c0_i32, %c0_i32_0 : i32, i32, i32
  }
}

</mosaic_0001>

<bundles_post_ra>
// kernel: tpu_custom_call.1
= control target key start
LH: loop header
LB: loop body
LE: loop exit
PB: predicated region body
PF: predicated region fallthrough
CT: control target
= control target key end

     0   :  { %6 = vsyncpa [#allocation3], 0  ;;  %s441_s0 = inlined_call_operand.hbm [shape: f32[8,128], index: 0, kind: input, shape index: {}]   ;;  %s442_s1 = inlined_call_operand.hbm [shape: f32[16,128], index: 1, kind: output, shape index: {}]  }
   0x1   :  { %7 = vsyncpa [#allocation4], 0 }
   0x2   :  { %9 = vsyncpa [#allocation4 + $0x1], 0  ;;  %s357_s6 = smov 0   ;;  %s359_s7 = smov 0  }
   0x3   :  { %s361_s8 = smov 0   ;;  %s363_s9 = smov 0  }
   0x4 LB: > { %s378_s10 = sadd.s32 4294967295, %s344_s9   ;;  %s188_s11 = sadd.s32 4294967294, %s344_s9   ;;  %s344_s9 = sphi %s363_s9, %s448_s9   ;;  %s340_s8 = sphi %s361_s8, %s447_s8   ;;  %s336_s7 = sphi %s359_s7, %s446_s7   ;;  %s332_s6 = sphi %s357_s6, %s445_s6  }
   0x5   : > { %s382_s12 = sadd.s32 1, %s344_s9   ;;  %s43_s13 = sadd.s32 1, %s340_s8 }
   0x6   : > { %s40_s14 = ssub.s32 %s344_s9, %s382_s12  ;;  %p53_p0 = scmp.ne.s32.totalorder %s340_s8, %s336_s7 }
   0x7   : > { %p41_p1 = scmp.eq.s32.totalorder %s40_s14, 0  ;;  %p54_p2 = scmp.eq.s32.totalorder %s378_s10, 1 }
   0x8   : > { %p59_p3 = scmp.ne.s32.totalorder %s336_s7, %s332_s6  ;;  %p60_p4 = scmp.eq.s32.totalorder %s188_s11, 1 }
   0x9   : > { %s393_s15 = scalar_select %p41_p1, %s340_s8, %s43_s13  }
   0xa   : > { %p395_p5 = por %p54_p2, %p53_p0  ;;  %p399_p6 = por %p60_p4, %p59_p3 }
   0xb   : > { %p189_p7 = scmp.ge.s32.totalorder %s344_s9, 1  ;;  %p67_p8 = scmp.lt.s32.totalorder %s344_s9, 3 }
   0xc   : > { %p212_p9 = scmp.eq.s32.totalorder %s378_s10, 0  ;;  %s79_s20 = sshll.u32 %s441_s0, 4  ;;  %s80_s20 = int_to_ptr.hbm [resolvable:$true] %s79_s20 }
   0xd   : > { %p68_p10 = pnand %p189_p7, %p67_p8  ;;  %s346_s21 = smov [#allocation2]  }
   0xe   : > { %s81_s22 = sshll.u32 %s346_s21, 4  ;;  %s82_s22 = int_to_ptr.vmem [resolvable:$true] %s81_s22 }
   0xf   : > { %p204_p11 = pneg %p68_p10  ;;  %94 = sbr.rel (%p68_p10) target bundleno = 37 (0x25), region = 24 }
  0x11   : > { %p205_p12 = pnand %p212_p9, %p204_p11 }
  0x13   : > { %207 = dma.hbm_to_vmem [thread:$0]  (!%p205_p12), %s80_s20, 128, %s82_s22, [#allocation3]  }
  0x14   : > { %323 = dma.done.wait (%p212_p9), [#allocation3], 128  }
  0x15   : > { %325 = vsyncadd (%p212_p9), [#allocation3], 4294967168  ;;  %s107_s23 = sand.u32 1, %s336_s7   ;;  %s195_s24 = sshll.u32 %s378_s10, 3  ;;  %v110_v0 = vld [vmem:[#allocation2] sm:$0xff] }
  0x16   : > { %s193_s25 = sshll.u32 %s107_s23, 3  ;;  %s124_s28 = scalar_lea.hbm %s442_s1, %s195_s24  ;;  %v111_v1 = vadd.f32 1.0, %v110_v0 }
  0x17   : > { %s109_s29 = scalar_lea.vmem [#allocation5], %s193_s25  ;;  %s128_s2 = sshll.u32 %s124_s28, 4  ;;  %s129_s2 = int_to_ptr.hbm [resolvable:$true] %s128_s2 }
  0x18   : > { %s126_s30 = sshll.u32 %s109_s29, 4  ;;  %112 = vst [vmem:[%s109_s29] sm:$0xff] %v111_v1  ;;  %s114_s3 = scalar_lea.sflag [#allocation4], %s107_s23  ;;  %s127_s30 = int_to_ptr.vmem [resolvable:$true] %s126_s30 }
  0x19   : > { %s292_s4 = sshra.s32 %s129_s2, 4  ;;  %s298_s13 = scalar_lea.hbm %s442_s1, 16  ;;  %s293_s4 = int_to_ptr.hbm [resolvable:$true] %s292_s4 }
  0x1a   : > { %s294_s5 = scalar_lea.hbm %s293_s4, 8  ;;  %p299_p2 = scmp.lt.s32.totalorder %s293_s4, %s442_s1 }
  0x1b   : > { %p295_p13 = scmp.ne.s32.totalorder %s293_s4, %s294_s5  ;;  %p300_p3 = scmp.lt.s32.totalorder %s298_s13, %s294_s5 }
  0x1d   : > { %p296_p0 = pnand %p295_p13, %p395_p5  ;;  %p301_p4 = por %p300_p3, %p299_p2 }
  0x1f   : > { %p297_p1 = pneg %p296_p0 }
  0x21   : > { %p302_p7 = pnand %p301_p4, %p297_p1 }
  0x23   : > { %305 = shalt.err (!%p302_p7)
}
  0x24   : > { %202 = dma.vmem_to_hbm [thread:$0]  (%p395_p5), %s127_s30, 128, %s129_s2, %s114_s3  }
  0x25 PF: > { %p214_p8 = scmp.ge.s32.totalorder %s344_s9, 2  ;;  %s140_s19 = sand.u32 1, %s332_s6  }
  0x26   : > { %s141_s20 = scalar_lea.sflag [#allocation4], %s140_s19 }
  0x27   : > { %p209_p9 = pnand %p214_p8, %p399_p6 }
  0x29   : > { %p210_p10 = pneg %p209_p9 }
  0x2b   : > { %327 = dma.done.wait (%p210_p10), %s141_s20, 128  }
  0x2c   : > { %329 = vsyncadd (%p210_p10), %s141_s20, 4294967168  ;;  %p12_p11 = scmp.ge.s32.totalorder %s382_s12, 4   ;;  %s445_s6 = smov %s336_s7 }
  0x2d   : > { %s446_s7 = smov %s340_s8  ;;  %s447_s8 = smov %s393_s15 }
  0x2e   : > { %s448_s9 = smov %s382_s12  ;;  %14 = sbr.rel (!%p12_p11) target bundleno = 4 (0x4), region = 61 }
  0x33   :  { %147 = vsyncpa [#allocation3], 1 }
  0x34   :  { %149 = vsyncpa [#allocation3 + $0x1], 1 }
  0x35   :  { %150 = vsyncpa [#allocation4], 1 }
  0x36   :  { %152 = vsyncpa [#allocation4 + $0x1], 1 }

// kernel: tpu_custom_call.1
= control target key start
LH: loop header
LB: loop body
LE: loop exit
PB: predicated region body
PF: predicated region fallthrough
CT: control target
= control target key end

     0   :  { %13 = vsyncpa [#allocation3], 0  ;;  %s2126_s0 = inlined_call_operand.vmem [shape: f32[2,4,256], index: 0, kind: input, shape index: {}]   ;;  %s2127_s1 = inlined_call_operand.vmem [shape: bf16[24,4], index: 1, kind: input, shape index: {}]   ;;  %s2128_s2 = inlined_call_operand.vmem [shape: f32[24,1], index: 2, kind: input, shape index: {}]   ;;  %s2129_s3 = inlined_call_operand.vmem [shape: f32[24,9], index: 3, kind: input, shape index: {}]   ;;  %s2130_s4 = inlined_call_operand.vmem [shape: s32[1,256], index: 4, kind: input, shape index: {}]   ;;  %s2131_s5 = inlined_call_operand.vmem [shape: f32[24,1], index: 5, kind: input, shape index: {}]   ;;  %s2132_s6 = inlined_call_operand.vmem [shape: bf16[4,24], index: 6, kind: input, shape index: {}]   ;;  %s2133_s7 = inlined_call_operand.vmem [shape: f32[4,1], index: 7, kind: input, shape index: {}]   ;;  %s2134_s8 = inlined_call_operand.hbm [shape: f32[2,4,256], index: 8, kind: output, shape index: {}]  }
   0x1   :  { %15 = vsyncpa [#allocation3 + $0x1], 0  ;;  %s1283_s27 = smov 0   ;;  %s1285_s28 = smov 0  }
   0x2   :  { %s1287_s29 = smov 0   ;;  %s1289_s30 = smov 0  }
   0x3 LB: > { %s1304_s9 = sadd.s32 4294967295, %s1219_s30   ;;  %s1046_s10 = sadd.s32 4294967294, %s1219_s30   ;;  %s1219_s30 = sphi %s1289_s30, %s2221_s30   ;;  %s1215_s29 = sphi %s1287_s29, %s2220_s29   ;;  %s1211_s28 = sphi %s1285_s28, %s2219_s28   ;;  %s1207_s27 = sphi %s1283_s27, %s2218_s27  }
   0x4   : > { %s1308_s11 = sadd.s32 1, %s1219_s30   ;;  %s201_s12 = sadd.s32 1, %s1215_s29 }
   0x5   : > { %s198_s13 = ssub.s32 %s1219_s30, %s1308_s11  ;;  %p211_p0 = scmp.ne.s32.totalorder %s1215_s29, %s1211_s28 }
   0x6   : > { %p199_p1 = scmp.eq.s32.totalorder %s198_s13, 0  ;;  %p212_p2 = scmp.eq.s32.totalorder %s1304_s9, 1 }
   0x7   : > { %p217_p3 = scmp.ne.s32.totalorder %s1211_s28, %s1207_s27  ;;  %p218_p4 = scmp.eq.s32.totalorder %s1046_s10, 1 }
   0x8   : > { %s1319_s14 = scalar_select %p199_p1, %s1215_s29, %s201_s12  }
   0x9   : > { %p1321_p5 = por %p212_p2, %p211_p0  ;;  %p1325_p6 = por %p218_p4, %p217_p3 }
   0xa   : > { %p1049_p7 = scmp.ge.s32.totalorder %s1219_s30, 1  ;;  %p265_p8 = scmp.lt.s32.totalorder %s1219_s30, 3 }
   0xc   : > { %p266_p9 = pnand %p1049_p7, %p265_p8 }
   0xe   : > { %269 = sbr.rel (%p266_p9) target bundleno = 606 (0x25e), region = 52 }
  0x13   : > { %v318_v0 = vld [vmem:[%s2128_s2 + $0x10] sm:$0xff]  ;;  %p299_p10 = scmp.lt.s32.totalorder %s1304_s9, 1  ;;  %v2144_v2 = vmov 0   ;;  %v316_v3 = vld [vmem:[%s2128_s2] sm:$0xff]  ;;  %v1354_v5 = vld [vmem:[%s2129_s3 + $0x8] sm:$0xff]  ;;  %v1222_v7 = vmov 1  }
  0x14   : > { %v1337_v1 = vld [vmem:[%s2129_s3 + $0x10] sm:$0xff]  ;;  %1128 = vset.pattern.permute.xlu1 %v2144_v2  ;;  %1129 = vset.pattern.permute.xlu2 %v2144_v2  ;;  %v317_v6 = vld [vmem:[%s2128_s2 + $0x8] sm:$0xff]  ;;  %vm362_vm0 = vcmask 1041408   ;;  %v1069_v14 = vld [vmem:[%s2127_s1] sm:$0xff]  ;;  %vm355_vm1 = vcmask 31744   ;;  %v1223_v15 = vmov 2  }
  0x15   : > { %344 = vperm.xlu1 %1128, %v318_v0   ;;  %442 = vperm.xlu2 %1129, %v1337_v1   ;;  %s300_s23 = scalar_select %p299_p10, %s1304_s9, 1  ;;  %v1370_v16 = vld [vmem:[%s2129_s3] sm:$0xff]  ;;  %v311_v17 = vld [vmem:[%s2127_s1 + $0x8] sm:$0xf]  ;;  %v1224_v18 = vmov 3   ;;  %v1225_v21 = vmov 7  }
  0x16   : > { %1127 = vset.pattern.permute.xlu0 %v2144_v2  ;;  %v352_v19 = vunpack.c.l.b16 %v311_v17  ;;  %v1226_v22 = vmov 5   ;;  %v1227_v23 = vmov 4   ;;  %v1228_v24 = vmov 8   ;;  %s1230_s25 = smov 17   ;;  %s1231_s26 = smov 1  }
  0x17   : > { %s1068_s24 = sshll.u32 %s300_s23, 3  ;;  %334 = vperm.xlu0 %1127, %v316_v3   ;;  %v1229_v25 = vmov 6   ;;  %s1233_s12 = smov 127  }
  0x18   : > { %s303_s10 = scalar_lea.vmem %s2126_s0, %s1068_s24  ;;  %v354_v20 = vpack.c.b16 %v352_v19, %v352_v19  ;;  %s1234_s13 = smov 16  }
  0x19   : > { %v323_v4 = vld [vmem:[%s303_s10] sm:$0xff]  ;;  %s1232_s10 = smov 15   ;;  %s1235_s17 = smov 113  }
  0x1a   : > { %325 = vst [vmem:[#allocation1] ss:$2 sm:$0xff] %v323_v4  ;;  %s1236_s18 = smov 112   ;;  %s1237_s19 = smov 111  }
  0x1b   : > { %s1070_s21 = sshll.u32 %s1304_s9, 3 }
  0x1c   : > { %s982_s24 = scalar_lea.hbm %s2134_s8, %s1070_s21 }
  0x1d   : > { %437 = vperm.xlu1 %1128, %v1354_v5   ;;  %1132 = vset.pattern.permute.xlu2 %v1222_v7 }
  0x1e   : > { %501 = vperm.xlu2 %1132, %v1337_v1  }
  0x1f   : > { %339 = vperm.xlu0 %1127, %v317_v6   ;;  %v305_v6 = vlaneseq }
  0x21   : > { %v326_v8 = vld.sshfl [vmem:[#allocation1] sm:$0xff pattern:$0x75316420]  ;;  %v327_v9 = vld.sshfl [vmem:[#allocation1 + $0x8] sm:$0xff pattern:$0x75316420] }
  0x22   : > { %v330_v10 = vpack.c.bf16 %v326_v8, %v326_v8  ;;  %v331_v11 = vpack.c.bf16 %v327_v9, %v327_v9  ;;  %957 = vst [vmem:[#allocation1] ss:$2 sm:$0xff] %v323_v4  ;;  %v1528_v9 = vand.u32 127, %v305_v6 }
  0x24   : > { %v364_v12 = vsel %vm362_vm0, %v330_v10, 0  ;;  %v367_v13 = vsel %vm362_vm0, %v331_v11, 0  ;;  %vm423_vm2 = vcmp.lt.s32.totalorder %v1528_v9, 17  ;;  %vm532_vm3 = vcmp.lt.s32.totalorder %v1528_v9, 15 }
  0x25   : > { %1131 = vset.pattern.permute.xlu1 %v1222_v7  ;;  %376 = vmatpush.bf16.msra.mxu0 %v364_v12  ;;  %vm485_vm4 = vcmp.lt.s32.totalorder %v1528_v9, 16  ;;  %vm589_vm6 = vcmp.lt.s32.totalorder %v1528_v9, 1  ;;  %vm2147_vm8 = vcmp.lt.s32.totalorder %v1528_v9, 127  ;;  %vm2149_vm9 = vcmp.ge.s32.totalorder %v1528_v9, 16 }
  0x26   : > { %394 = vmatpush.bf16.msra.mxu1 %v367_v13  ;;  %497 = vperm.xlu1 %1131, %v1354_v5  }
  0x27   : > { %1134 = vset.pattern.permute.xlu2 %v1223_v15  ;;  %1130 = vset.pattern.permute.xlu0 %v1222_v7 }
  0x28   : > { %1057 = vmatmul.msk.bf16.vlgmr.msra.gmra.mxu0 %vm355_vm1, %v1069_v14  ;;  %544 = vperm.xlu2 %1134, %v1354_v5  }
  0x29   : > { %1059 = vmatmul.msk.bf16.vlgmr.msra.gmra.mxu1 %vm355_vm1, %v1069_v14  ;;  %493 = vperm.xlu0 %1130, %v1370_v16  }
  0x2e   : > { %1133 = vset.pattern.permute.xlu1 %v1223_v15 }
  0x2f   : > { %540 = vperm.xlu1 %1133, %v1370_v16  }
  0x30   : > { %1136 = vset.pattern.permute.xlu2 %v1224_v18 }
  0x31   : > { %605 = vperm.xlu2 %1136, %v1337_v1   ;;  %1135 = vset.pattern.permute.xlu0 %v1223_v15  ;;  %v321_v15 = vld [vmem:[%s2131_s5 + $0x10] sm:$0xff] }
  0x32   : > { %548 = vperm.xlu0 %1135, %v1337_v1  }
  0x37   : > { %1140 = vset.pattern.permute.xlu1 %v1225_v21 }
  0x38   : > { %790 = vperm.xlu1 %1140, %v1337_v1   ;;  %1058 = vmatmul.msk.bf16.gmra.mxu0 %vm355_vm1, %v354_v20 }
  0x39   : > { %1138 = vset.pattern.permute.xlu2 %v1226_v22  ;;  %1060 = vmatmul.msk.bf16.gmra.mxu1 %vm355_vm1, %v354_v20 }
  0x3a   : > { %680 = vperm.xlu2 %1138, %v1337_v1   ;;  %1137 = vset.pattern.permute.xlu0 %v1227_v23 }
  0x3b   : > { %637 = vperm.xlu0 %1137, %v1337_v1  }
  0x40   : > { %1143 = vset.pattern.permute.xlu1 %v1224_v18 }
  0x41   : > { %601 = vperm.xlu1 %1143, %v1354_v5  }
  0x42   : > { %1141 = vset.pattern.permute.xlu2 %v1228_v24 }
  0x43   : > { %843 = vperm.xlu2 %1141, %v1337_v1   ;;  %1139 = vset.pattern.permute.xlu0 %v1229_v25 }
  0x44   : > { %731 = vperm.xlu0 %1139, %v1337_v1  }
  0x49   : > { %1145 = vset.pattern.permute.xlu1 %v1227_v23 }
  0x4a   : > { %633 = vperm.xlu1 %1145, %v1354_v5  }
  0x4b   : > { %1144 = vset.pattern.permute.xlu2 %v1227_v23 }
  0x4c   : > { %629 = vperm.xlu2 %1144, %v1370_v16   ;;  %1142 = vset.pattern.permute.xlu0 %v1224_v18 }
  0x4d   : > { %597 = vperm.xlu0 %1142, %v1370_v16  }
  0x52   : > { %1149 = vset.pattern.permute.xlu1 %v1229_v25 }
  0x54   : > { %1146 = vset.pattern.permute.xlu2 %v1226_v22 }
  0x55   : > { %1147 = vset.pattern.permute.xlu0 %v1226_v22 }
  0x6f   : > { %v1419_v41 = vpop.permute.xlu2 %442 }
  0x78   : > { %v1431_v45 = vpop.permute.xlu2 %501 }
  0x82   : > { %v1443_v48 = vpop.permute.xlu2 %544 }
  0x87   : > { %v345_v46 = vpop.permute.xlu1 %344 }
  0x89   : > { %v335_v26 = vpop.permute.xlu0 %334 }
  0x8b   : > { %v1453_v51 = vpop.permute.xlu2 %605 }
  0x8f   : > { %v1457_v53 = vpop.permute.xlu1 %437 }
  0x91   : > { %v340_v35 = vpop.permute.xlu0 %339 }
  0x94   : > { %v1465_v54 = vpop.permute.xlu2 %680 }
  0x98   : > { %v1473_v55 = vpop.permute.xlu1 %497 }
  0x99   : > { %2156 = vst [vmem:[#allocation9_spill] sm:$0xff] %v1473_v55 }
  0x9b   : > { %v1475_v56 = vpop.permute.xlu0 %493 }
  0x9c   : > { %2157 = vst [vmem:[#allocation10_spill] sm:$0xff] %v1475_v56 }
  0x9d   : > { %v1479_v57 = vpop.permute.xlu2 %843 }
  0xa1   : > { %v1485_v58 = vpop.permute.xlu1 %540 }
  0xa4   : > { %v1487_v59 = vpop.permute.xlu0 %548 }
  0xa5   : > { %v378_v27 = vpop.f32.mrf.mxu0 }
  0xa6   : > { %v379_v28 = vadd.f32 %v378_v27, %v335_v26  ;;  %v396_v29 = vpop.f32.mrf.mxu1  ;;  %v1495_v60 = vpop.permute.xlu2 %629 }
  0xa7   : > { %v397_v30 = vadd.f32 %v396_v29, %v335_v26  ;;  %2158 = vst [vmem:[#allocation11_spill] sm:$0xff] %v1495_v60 }
  0xa8   : > { %v1395_v31 = vmax.f32 %v379_v28, 0.0 }
  0xa9   : > { %v1397_v32 = vmax.f32 %v397_v30, 0.0 }
  0xaa   : > { %2152 = vst [vmem:[#allocation5_spill] sm:$0xff] %v1395_v31  ;;  %411 = vrot.lane.b32.xlu1 %v1395_v31, %s1230_s25  ;;  %v1497_v61 = vpop.permute.xlu1 %790 }
  0xab   : > { %2153 = vst [vmem:[#allocation6_spill] sm:$0xff] %v1397_v32  ;;  %583 = vrot.lane.b32.xlu2 %v1397_v32, %s1231_s26  ;;  %417 = vrot.lane.b32.xlu0 %v1397_v32, %s1230_s25 }
  0xad   : > { %v380_v33 = vpop.f32.mrf.mxu0  ;;  %v1499_v62 = vpop.permute.xlu0 %637 }
  0xae   : > { %v398_v34 = vpop.f32.mrf.mxu1  ;;  %v381_v36 = vadd.f32 %v380_v33, %v340_v35 }
  0xaf   : > { %v399_v43 = vadd.f32 %v398_v34, %v340_v35  ;;  %v1584_v34 = vld [vmem:[%s2130_s4] sm:$0x3] }
  0xb0   : > { %v1411_v38 = vmax.f32 %v381_v36, 0.0  ;;  %vm453_vm5 = vcmp.ge.s32.totalorder %v1584_v34, 1  ;;  %vm557_vm0 = vcmp.lt.s32.totalorder %v1584_v34, 15 }
  0xb1   : > { %v1427_v44 = vmax.f32 %v399_v43, 0.0  ;;  %v454_v35 = vsel %vm453_vm5, 1, %v2144_v2 }
  0xb2   : > { %520 = vrot.lane.b32.xlu1 %v1395_v31, %s1232_s10  ;;  %2154 = vst [vmem:[#allocation7_spill] sm:$0xff] %v1411_v38 }
  0xb3   : > { %652 = vrot.lane.b32.xlu2 %v1395_v31, %s1233_s12  ;;  %473 = vrot.lane.b32.xlu0 %v1395_v31, %s1234_s13  ;;  %2155 = vst [vmem:[#allocation8_spill] sm:$0xff] %v1427_v44  ;;  %v1508_v1 = vpop.permute.xlu1 %601 }
  0xb5   : > { %v383_v37 = vpop.f32.mrf.mxu0 }
  0xb6   : > { %v401_v39 = vpop.f32.mrf.mxu1  ;;  %v384_v47 = vadd.f32 %v383_v37, %v345_v46  ;;  %v1506_v0 = vpop.permute.xlu0 %731 }
  0xb7   : > { %v402_v50 = vadd.f32 %v401_v39, %v345_v46 }
  0xb8   : > { %v1445_v49 = vmax.f32 %v384_v47, 0.0  ;;  %v455_v47 = vperm.slane %v454_v35, 0 }
  0xb9   : > { %v1455_v52 = vmax.f32 %v402_v50, 0.0  ;;  %v456_v50 = vperm.slane %v454_v35, 1 }
  0xba   : > { %526 = vrot.lane.b32.xlu1 %v1397_v32, %s1232_s10  ;;  %vm1602_vm7 = vcmp.ne.s32.totalorder %v455_v47, 0  ;;  %vm1670_vm14 = vcmp.eq.s32.totalorder %v455_v47, 1 }
  0xbb   : > { %413 = vrot.lane.b32.xlu2 %v1411_v38, %s1230_s25  ;;  %479 = vrot.lane.b32.xlu0 %v1397_v32, %s1234_s13  ;;  %vm1611_vm10 = vcmp.ne.s32.totalorder %v456_v50, 0  ;;  %vm459_vm11 = vmand %vm2149_vm9, %vm1602_vm7  ;;  %vm1674_vm15 = vcmp.eq.s32.totalorder %v456_v50, 1 }
  0xbc   : > { %v1522_v7 = vpop.permute.xlu1 %633 }
  0xbd   : > { %v385_v40 = vpop.f32.mrf.mxu0  ;;  %2159 = vst [vmem:[#allocation12_spill] sm:$0xff] %v1522_v7 }
  0xbe   : > { %v403_v42 = vpop.f32.mrf.mxu1 }
  0xbf   : > { %v598_v4 = vpop.permute.xlu0 %597 }
  0xc2   : > { %577 = vrot.lane.b32.xlu1 %v1395_v31, %s1231_s26 }
  0xc3   : > { %522 = vrot.lane.b32.xlu2 %v1411_v38, %s1232_s10  ;;  %703 = vrot.lane.b32.xlu0 %v1395_v31, %s1235_s17 }
  0xca   : > { %658 = vrot.lane.b32.xlu1 %v1397_v32, %s1233_s12 }
  0xcb   : > { %528 = vrot.lane.b32.xlu2 %v1427_v44, %s1232_s10  ;;  %585 = vrot.lane.b32.xlu0 %v1427_v44, %s1231_s26 }
  0xd2   : > { %419 = vrot.lane.b32.xlu1 %v1427_v44, %s1230_s25 }
  0xd3   : > { %579 = vrot.lane.b32.xlu2 %v1411_v38, %s1231_s26  ;;  %654 = vrot.lane.b32.xlu0 %v1411_v38, %s1233_s12 }
  0xda   : > { %475 = vrot.lane.b32.xlu1 %v1411_v38, %s1234_s13 }
  0xdb   : > { %660 = vrot.lane.b32.xlu2 %v1427_v44, %s1233_s12  ;;  %524 = vrot.lane.b32.xlu0 %v1445_v49, %s1232_s10 }
  0xe2   : > { %481 = vrot.lane.b32.xlu1 %v1427_v44, %s1234_s13 }
  0xe3   : > { %415 = vrot.lane.b32.xlu2 %v1445_v49, %s1230_s25  ;;  %530 = vrot.lane.b32.xlu0 %v1455_v52, %s1232_s10  ;;  %s986_s10 = sshll.u32 %s982_s24, 4  ;;  %s987_s10 = int_to_ptr.hbm [resolvable:$true] %s986_s10 }
  0xea   : > { %581 = vrot.lane.b32.xlu1 %v1445_v49, %s1231_s26 }
  0xeb   : > { %421 = vrot.lane.b32.xlu2 %v1455_v52, %s1230_s25  ;;  %766 = vrot.lane.b32.xlu0 %v1445_v49, %s1236_s18 }
  0xf2   : > { %587 = vrot.lane.b32.xlu1 %v1455_v52, %s1231_s26 }
  0xf3   : > { %477 = vrot.lane.b32.xlu2 %v1445_v49, %s1234_s13  ;;  %711 = vrot.lane.b32.xlu0 %v1427_v44, %s1235_s17 }
  0xfa   : > { %656 = vrot.lane.b32.xlu1 %v1445_v49, %s1233_s12 }
  0xfb   : > { %483 = vrot.lane.b32.xlu2 %v1455_v52, %s1234_s13  ;;  %768 = vrot.lane.b32.xlu0 %v1397_v32, %s1236_s18 }
 0x102   : > { %707 = vrot.lane.b32.xlu1 %v1445_v49, %s1235_s17 }
 0x103   : > { %662 = vrot.lane.b32.xlu2 %v1455_v52, %s1233_s12  ;;  %676 = vperm.xlu0 %1147, %v1354_v5   ;;  %s1171_s12 = sshra.s32 %s987_s10, 4  ;;  %s1172_s12 = int_to_ptr.hbm [resolvable:$true] %s1171_s12 }
 0x104   : > { %s1173_s13 = scalar_lea.hbm %s1172_s12, 8  ;;  %p1178_p0 = scmp.lt.s32.totalorder %s1172_s12, %s2134_s8 }
 0x105   : > { %v584_v63 = vpop.permute.xlu2 %583  ;;  %p1174_p11 = scmp.ne.s32.totalorder %s1172_s12, %s1173_s13 }
 0x107   : > { %p1175_p12 = pnand %p1174_p11, %p1321_p5 }
 0x109   : > { %p1176_p13 = pneg %p1175_p12 }
 0x10a   : > { %772 = vrot.lane.b32.xlu1 %v1455_v52, %s1236_s18 }
 0x10b   : > { %713 = vrot.lane.b32.xlu2 %v1455_v52, %s1235_s17  ;;  %1148 = vset.pattern.permute.xlu0 %v2144_v2 }
 0x10c   : > { %432 = vperm.xlu0 %1148, %v1370_v16  }
 0x10d   : > { %v1516_v3 = vpop.permute.xlu2 %652 }
 0x112   : > { %825 = vrot.lane.b32.xlu1 %v1455_v52, %s1237_s19 }
 0x113   : > { %819 = vrot.lane.b32.xlu2 %v1445_v49, %s1237_s19 }
 0x114   : > { %815 = vrot.lane.b32.xlu0 %v1395_v31, %s1237_s19 }
 0x115   : > { %v1526_v8 = vpop.permute.xlu2 %413 }
 0x11a   : > { %705 = vrot.lane.b32.xlu1 %v1411_v38, %s1235_s17 }
 0x11b   : > { %709 = vrot.lane.b32.xlu2 %v1397_v32, %s1235_s17 }
 0x11c   : > { %823 = vrot.lane.b32.xlu0 %v1427_v44, %s1237_s19  ;;  %v412_v10 = vpop.permute.xlu1 %411 }
 0x11d   : > { %v418_v11 = vpop.permute.xlu0 %417  ;;  %v523_v12 = vpop.permute.xlu2 %522 }
 0x11e   : > { %v1539_v13 = vsel %vm423_vm2, %v412_v10, %v418_v11  ;;  %v1543_v14 = vsel %vm423_vm2, %v418_v11, %v412_v10 }
 0x122   : > { %762 = vrot.lane.b32.xlu1 %v1395_v31, %s1236_s18 }
 0x123   : > { %764 = vrot.lane.b32.xlu2 %v1411_v38, %s1236_s18 }
 0x124   : > { %896 = vperm.xlu0 %1148, %v321_v15   ;;  %v521_v17 = vpop.permute.xlu1 %520 }
 0x125   : > { %v529_v18 = vpop.permute.xlu2 %528  ;;  %v474_v19 = vpop.permute.xlu0 %473 }
 0x126   : > { %v1555_v20 = vsel %vm532_vm3, %v523_v12, %v529_v18  ;;  %v1559_v22 = vsel %vm532_vm3, %v529_v18, %v523_v12  ;;  %v462_v18 = vsel %vm1611_vm10, 1, %v2144_v2 }
 0x12a   : > { %770 = vrot.lane.b32.xlu1 %v1427_v44, %s1236_s18  ;;  %v553_v44 = vmul.f32 %v1443_v48, %v1559_v22 }
 0x12b   : > { %672 = vperm.xlu2 %1146, %v1370_v16  }
 0x12c   : > { %v527_v23 = vpop.permute.xlu1 %526 }
 0x12d   : > { %v580_v26 = vpop.permute.xlu2 %579  ;;  %v480_v27 = vpop.permute.xlu0 %479  ;;  %v1567_v28 = vsel %vm532_vm3, %v521_v17, %v527_v23  ;;  %v1571_v29 = vsel %vm532_vm3, %v527_v23, %v521_v17  ;;  %v461_v17 = vsel %vm459_vm11, 1, %v2144_v2  ;;  %v464_v23 = vperm.slane %v462_v18, 0 }
 0x12e   : > { %v1575_v30 = vsel %vm485_vm4, %v474_v19, %v480_v27  ;;  %v1579_v33 = vsel %vm485_vm4, %v480_v27, %v474_v19  ;;  %v463_v19 = vperm.slane %v461_v17, 0 }
 0x12f   : > { %2160 = vst [vmem:[#allocation13_spill] sm:$0xff] %v1575_v30  ;;  %vm1659_vm13 = vcmp.eq.s32.totalorder %v464_v23, 1 }
 0x130   : > { %2161 = vst [vmem:[#allocation14_spill] sm:$0xff] %v1579_v33  ;;  %vm1655_vm12 = vcmp.eq.s32.totalorder %v463_v19, 1 }
 0x132   : > { %723 = vperm.xlu1 %1149, %v1370_v16  }
 0x133   : > { %1150 = vset.pattern.permute.xlu2 %v1229_v25 }
 0x134   : > { %727 = vperm.xlu2 %1150, %v1354_v5   ;;  %v578_v36 = vpop.permute.xlu1 %577 }
 0x135   : > { %v661_v37 = vpop.permute.xlu2 %660  ;;  %v1592_v39 = vpop.permute.xlu0 %703  ;;  %v590_v40 = vsel %vm589_vm6, %v578_v36, %v584_v63  ;;  %v593_v42 = vsel %vm589_vm6, %v584_v63, %v578_v36 }
 0x136   : > { %2162 = vst [vmem:[#allocation15_spill] sm:$0xff] %v1592_v39  ;;  %v1598_v43 = vmul.f32 %v598_v4, %v593_v42  ;;  %v1600_v46 = vmul.f32 %v598_v4, %v590_v40 }
 0x13a   : > { %1151 = vset.pattern.permute.xlu1 %v1225_v21 }
 0x13b   : > { %782 = vperm.xlu1 %1151, %v1370_v16  }
 0x13c   : > { %1152 = vset.pattern.permute.xlu2 %v1225_v21  ;;  %v659_v63 = vpop.permute.xlu1 %658 }
 0x13d   : > { %786 = vperm.xlu2 %1152, %v1354_v5   ;;  %v1620_v6 = vpop.permute.xlu2 %415  ;;  %v586_v10 = vpop.permute.xlu0 %585  ;;  %v1625_v11 = vsel %vm2147_vm8, %v1516_v3, %v659_v63  ;;  %v1630_v21 = vsel %vm2147_vm8, %v659_v63, %v1516_v3 }
 0x13e   : > { %v591_v12 = vsel %vm589_vm6, %v580_v26, %v586_v10  ;;  %v594_v15 = vsel %vm589_vm6, %v586_v10, %v580_v26 }
 0x13f   : > { %v610_v3 = vmul.f32 %v1508_v1, %v594_v15  ;;  %v611_v35 = vmul.f32 %v1508_v1, %v591_v12 }
 0x141   : > { %v618_v19 = vsel %vm1670_vm14, %v610_v3, 0.0  ;;  %v319_v3 = vld [vmem:[%s2131_s5] sm:$0xff] }
 0x143   : > { %817 = vrot.lane.b32.xlu1 %v1411_v38, %s1237_s19  ;;  %v554_v38 = vmul.f32 %v1443_v48, %v1555_v20  ;;  %v1771_v48 = vmul.f32 %v1485_v58, %v1571_v29 }
 0x144   : > { %v420_v27 = vpop.permute.xlu1 %419  ;;  %1153 = vset.pattern.permute.xlu1 %v1228_v24 }
 0x145   : > { %821 = vrot.lane.b32.xlu2 %v1397_v32, %s1237_s19  ;;  %v1647_v26 = vpop.permute.xlu2 %421  ;;  %v655_v36 = vpop.permute.xlu0 %654  ;;  %v425_v40 = vsel %vm423_vm2, %v1526_v8, %v420_v27  ;;  %v428_v42 = vsel %vm423_vm2, %v420_v27, %v1526_v8  ;;  %s296_s19 = sand.u32 1, %s1211_s28  }
 0x146   : > { %v666_v10 = vsel %vm2147_vm8, %v655_v36, %v661_v37  ;;  %v669_v12 = vsel %vm2147_vm8, %v661_v37, %v655_v36  ;;  %1154 = vset.pattern.permute.xlu2 %v1228_v24  ;;  %v447_v15 = vmul.f32 %v1457_v53, %v428_v42  ;;  %v448_v8 = vmul.f32 %v1457_v53, %v425_v40  ;;  %s1050_s20 = sshll.u32 %s296_s19, 3  ;;  %s971_s9 = scalar_lea.sflag [#allocation3], %s296_s19 }
 0x147   : > { %v619_v37 = vsel %vm1674_vm15, %v611_v35, 0.0  ;;  %v320_v35 = vld [vmem:[%s2131_s5 + $0x8] sm:$0xff]  ;;  %v429_v22 = vsel %vm423_vm2, %v1647_v26, %v1620_v6  ;;  %v426_v55 = vsel %vm423_vm2, %v1620_v6, %v1647_v26  ;;  %s298_s25 = scalar_lea.vmem [#allocation2], %s1050_s20  ;;  %s1177_s20 = scalar_lea.hbm %s2134_s8, 16 }
 0x148   : > { %v469_v24 = vsel %vm1655_vm12, %v447_v15, 0.0  ;;  %v470_v53 = vsel %vm1659_vm13, %v448_v8, 0.0  ;;  %v322_v8 = vld [vmem:[%s2133_s7] sm:$0xf]  ;;  %s984_s26 = sshll.u32 %s298_s25, 4  ;;  %p1179_p1 = scmp.lt.s32.totalorder %s1177_s20, %s1173_s13  ;;  %s985_s26 = int_to_ptr.vmem [resolvable:$true] %s984_s26 }
 0x149   : > { %v1686_v47 = vadd.f32 %v618_v19, %v469_v24  ;;  %v1688_v23 = vadd.f32 %v619_v37, %v470_v53  ;;  %v558_v53 = vsel %vm557_vm0, 1, %v2144_v2 }
 0x14a   : > { %v560_v34 = vperm.slane %v558_v53, 1  ;;  %p1180_p2 = por %p1179_p1, %p1178_p0 }
 0x14b   : > { %835 = vperm.xlu1 %1153, %v1370_v16  }
 0x14c   : > { %v476_v50 = vpop.permute.xlu1 %475  ;;  %vm1733_vm11 = vcmp.ne.s32.totalorder %v560_v34, 0  ;;  %p1181_p3 = pnand %p1180_p2, %p1176_p13 }
 0x14d   : > { %v478_v27 = vpop.permute.xlu2 %477  ;;  %v1691_v36 = vpop.permute.xlu0 %524  ;;  %839 = vperm.xlu2 %1154, %v1354_v5  }
 0x153   : > { %1155 = vset.pattern.permute.xlu1 %v2144_v2 }
 0x154   : > { %886 = vperm.xlu1 %1155, %v319_v3   ;;  %v482_v40 = vpop.permute.xlu1 %481 }
 0x155   : > { %v484_v42 = vpop.permute.xlu2 %483  ;;  %v531_v16 = vpop.permute.xlu0 %530  ;;  %v1703_v15 = vsel %vm485_vm4, %v476_v50, %v482_v40  ;;  %v1707_v5 = vsel %vm485_vm4, %v482_v40, %v476_v50  ;;  %1156 = vset.pattern.permute.xlu2 %v2144_v2  ;;  %v559_v50 = vperm.slane %v558_v53, 0  ;;  %v566_v53 = vsel %vm1733_vm11, 1, %v2144_v2 }
 0x156   : > { %2175 = vst [vmem:[#allocation16_spill] sm:$0xff] %v1703_v15  ;;  %891 = vperm.xlu2 %1156, %v320_v35   ;;  %v568_v39 = vperm.slane %v566_v53, 0  ;;  %v488_v6 = vsel %vm485_vm4, %v478_v27, %v484_v42  ;;  %v491_v26 = vsel %vm485_vm4, %v484_v42, %v478_v27  ;;  %vm715_vm4 = vcmp.lt.s32.totalorder %v1528_v9, 113 }
 0x157   : > { %vm1721_vm1 = vcmp.ne.s32.totalorder %v559_v50, 0  ;;  %vm1784_vm8 = vcmp.eq.s32.totalorder %v559_v50, 1 }
 0x158   : > { %vm563_vm5 = vmand %vm2149_vm9, %vm1721_vm1  ;;  %vm1788_vm9 = vcmp.eq.s32.totalorder %v560_v34, 1 }
 0x159   : > { %v565_v60 = vsel %vm563_vm5, 1, %v2144_v2  ;;  %vm1757_vm5 = vcmp.eq.s32.totalorder %v568_v39, 1  ;;  %v1774_v2 = vadd.s32 128, %v1528_v9 }
 0x15a   : > { %v567_v33 = vperm.slane %v565_v60, 0 }
 0x15b   : > { %vm741_vm2 = vcmp.lt.s32.totalorder %v1774_v2, 240 }
 0x15c   : > { %917 = vperm.xlu1 %1155, %v322_v8   ;;  %v1714_v19 = vpop.permute.xlu1 %581  ;;  %vm1749_vm0 = vcmp.eq.s32.totalorder %v567_v33, 1 }
 0x15d   : > { %v1716_v37 = vpop.permute.xlu2 %662  ;;  %v1718_v24 = vpop.permute.xlu0 %766  ;;  %v573_v60 = vsel %vm1749_vm0, %v553_v44, 0.0  ;;  %v1778_v44 = vmul.f32 %v1485_v58, %v1567_v28  ;;  %v571_v27 = vsel %vm1749_vm0, %v1771_v48, 0.0 }
 0x15f   : > { %v572_v42 = vsel %vm1757_vm5, %v1778_v44, 0.0 }
 0x164   : > { %v588_v3 = vpop.permute.xlu1 %587 }
 0x165   : > { %v1725_v35 = vpop.permute.xlu2 %713  ;;  %v1727_v32 = vpop.permute.xlu0 %711 }
 0x16c   : > { %v1738_v31 = vpop.permute.xlu1 %656 }
 0x16d   : > { %v1740_v30 = vpop.permute.xlu2 %819  ;;  %v1742_v56 = vpop.permute.xlu0 %768 }
 0x16e   : > { %2180 = vst [vmem:[#allocation17_spill] sm:$0xff] %v1742_v56 }
 0x174   : > { %v1755_v15 = vpop.permute.xlu1 %707 }
 0x175   : > { %v1767_v33 = vpop.permute.xlu2 %709  ;;  %v677_v53 = vpop.permute.xlu0 %676  ;;  %v721_v17 = vsel %vm715_vm4, %v1725_v35, %v1755_v15 }
 0x176   : > { %2185 = vst [vmem:[#allocation18_spill] sm:$0xff] %v1767_v33  ;;  %v685_v20 = vmul.f32 %v677_v53, %v666_v10  ;;  %v686_v39 = vmul.f32 %v677_v53, %v669_v12  ;;  %v574_v10 = vsel %vm1757_vm5, %v554_v38, 0.0  ;;  %v1795_v12 = vmul.f32 %v1419_v41, %v429_v22 }
 0x177   : > { %v1811_v38 = vmul.f32 %v1499_v62, %v1445_v49  ;;  %v1814_v22 = vmul.f32 %v1419_v41, %v426_v55  ;;  %v645_v53 = vmul.f32 %v1499_v62, %v1455_v52  ;;  %v538_v49 = vsel %vm532_vm3, %v531_v16, %v1691_v36 }
 0x178   : > { %v693_v58 = vsel %vm1784_vm8, %v685_v20, 0.0  ;;  %v694_v28 = vsel %vm1788_vm9, %v686_v39, 0.0  ;;  %v508_v41 = vmul.f32 %v1431_v45, %v491_v26  ;;  %v509_v55 = vmul.f32 %v1431_v45, %v488_v6 }
 0x179   : > { %v1805_v50 = vadd.f32 %v693_v58, %v573_v60  ;;  %v1807_v34 = vadd.f32 %v694_v28, %v574_v10  ;;  %v535_v52 = vsel %vm532_vm3, %v1691_v36, %v531_v16  ;;  %v2190_v62 = vmov 0   ;;  %vm743_vm3 = vmand %vm741_vm2, %vm1611_vm10 }
 0x17a   : > { %v744_v60 = vsel %vm1602_vm7, 1, %v2190_v62  ;;  %v616_v39 = vsel %vm1670_vm14, %v1598_v43, 0.0  ;;  %v617_v10 = vsel %vm1674_vm15, %v1600_v46, 0.0  ;;  %v471_v45 = vsel %vm1655_vm12, %v1795_v12, 0.0  ;;  %vm853_vm7 = vmand %vm741_vm2, %vm1733_vm11 }
 0x17b   : > { %v595_v36 = vsel %vm589_vm6, %v588_v3, %v1714_v19  ;;  %v472_v43 = vsel %vm1659_vm13, %v1814_v22, 0.0  ;;  %v1858_v46 = vmul.f32 %v1487_v59, %v538_v49  ;;  %v592_v16 = vsel %vm589_vm6, %v1714_v19, %v588_v3 }
 0x17c   : > { %v773_v20 = vpop.permute.xlu1 %772  ;;  %v1865_v4 = vmul.f32 %v1487_v59, %v535_v52  ;;  %v746_v28 = vperm.slane %v744_v60, 0  ;;  %vm2191_vm10 = vcmp.ge.s32.totalorder %v1528_v9, 16  ;;  %v1875_v19 = vadd.f32 %v645_v53, %v509_v55 }
 0x17d   : > { %v1852_v25 = vpop.permute.xlu2 %764  ;;  %v518_v49 = vsel %vm2191_vm10, %v508_v41, 0.0  ;;  %v612_v3 = vmul.f32 %v1453_v51, %v595_v36  ;;  %v745_v59 = vsel %vm743_vm3, 1, %v2190_v62  ;;  %v613_v52 = vmul.f32 %v1453_v51, %v592_v16 }
 0x17e   : > { %v433_v58 = vpop.permute.xlu0 %432  ;;  %v854_v8 = vsel %vm1721_vm1, 1, %v2190_v62  ;;  %vm774_vm6 = vcmp.lt.s32.totalorder %v1528_v9, 112  ;;  %v855_v55 = vsel %vm853_vm7, 1, %v2190_v62  ;;  %v575_v51 = vsel %vm1749_vm0, %v1858_v46, 0.0 }
 0x17f   : > { %v445_v6 = vmul.f32 %v433_v58, %v1543_v14  ;;  %v446_v26 = vmul.f32 %v433_v58, %v1539_v13  ;;  %v576_v60 = vsel %vm1757_vm5, %v1865_v4, 0.0  ;;  %v747_v36 = vperm.slane %v745_v59, 0 }
 0x180   : > { %vm1899_vm11 = vcmp.eq.s32.totalorder %v746_v28, 1  ;;  %vm2194_vm1 = vcmp.lt.s32.totalorder %v1528_v9, 127  ;;  %vm827_vm7 = vcmp.lt.s32.totalorder %v1528_v9, 111  ;;  %v620_v16 = vsel %vm1670_vm14, %v612_v3, 0.0 }
 0x181   : > { %v467_v14 = vsel %vm1655_vm12, %v445_v6, 0.0  ;;  %v468_v13 = vsel %vm1659_vm13, %v446_v26, 0.0  ;;  %vm2195_vm3 = vmmov %vm2194_vm1  ;;  %v621_v58 = vsel %vm1674_vm15, %v613_v52, 0.0  ;;  %v780_v4 = vsel %vm774_vm6, %v773_v20, %v1718_v24 }
 0x182   : > { %v1888_v53 = vadd.f32 %v616_v39, %v467_v14  ;;  %v1890_v41 = vadd.f32 %v617_v10, %v468_v13  ;;  %v667_v39 = vsel %vm2194_vm1, %v1738_v31, %v1716_v37  ;;  %v670_v62 = vsel %vm2195_vm3, %v1716_v37, %v1738_v31 }
 0x183   : > { %v856_v10 = vperm.slane %v854_v8, 0  ;;  %v857_v6 = vperm.slane %v855_v55, 0  ;;  %v718_v31 = vsel %vm715_vm4, %v1755_v15, %v1725_v35  ;;  %v687_v3 = vmul.f32 %v1465_v54, %v667_v39 }
 0x184   : > { %v826_v46 = vpop.permute.xlu1 %825  ;;  %v688_v59 = vmul.f32 %v1465_v54, %v670_v62  ;;  %v738_v35 = vmul.f32 %v1506_v0, %v718_v31  ;;  %v739_v13 = vmul.f32 %v1506_v0, %v721_v17  ;;  %vm1961_vm14 = vcmp.eq.s32.totalorder %v747_v36, 1 }
 0x185   : > { %v673_v28 = vpop.permute.xlu2 %672  ;;  %v830_v52 = vsel %vm827_vm7, %v1740_v30, %v826_v46  ;;  %v833_v14 = vsel %vm827_vm7, %v826_v46, %v1740_v30  ;;  %vm1965_vm15 = vcmp.eq.s32.totalorder %v856_v10, 1  ;;  %v695_v48 = vsel %vm1784_vm8, %v687_v3, 0.0 }
 0x186   : > { %v683_v37 = vmul.f32 %v673_v28, %v1625_v11  ;;  %v684_v18 = vmul.f32 %v673_v28, %v1630_v21  ;;  %v1929_v26 = vpop.permute.xlu0 %815  ;;  %v777_v11 = vsel %vm774_vm6, %v1718_v24, %v773_v20  ;;  %v798_v21 = vmul.f32 %v1497_v61, %v780_v4 }
 0x187   : > { %v850_v0 = vmul.f32 %v1479_v57, %v830_v52  ;;  %v851_v7 = vmul.f32 %v1479_v57, %v833_v14  ;;  %v696_v56 = vsel %vm1788_vm9, %v688_v59, 0.0  ;;  %v797_v44 = vmul.f32 %v1497_v61, %v777_v11  ;;  %v2202_v59 = vld [vmem:[#allocation9_spill] sm:$0xff] }
 0x188   : > { %v691_v15 = vsel %vm1784_vm8, %v683_v37, 0.0  ;;  %v692_v54 = vsel %vm1788_vm9, %v684_v18, 0.0  ;;  %vm1976_vm0 = vcmp.eq.s32.totalorder %v857_v6, 1  ;;  %v626_v55 = vadd.f32 %v620_v16, %v471_v45  ;;  %vm2204_vm9 = vmmov %vm2191_vm10 }
 0x189   : > { %v1953_v30 = vadd.f32 %v691_v15, %v571_v27  ;;  %v1959_v24 = vadd.f32 %v692_v54, %v572_v42  ;;  %v650_v42 = vadd.f32 %v1811_v38, %v518_v49  ;;  %v627_v57 = vadd.f32 %v621_v58, %v472_v43  ;;  %v2203_v54 = vld [vmem:[#allocation16_spill] sm:$0xff]  ;;  %vm2213_vm12 = vmmov %vm2204_vm9 }
 0x18a   : > { %v808_v33 = vsel %vm741_vm2, %v798_v21, 0.0  ;;  %v754_v29 = vsel %vm1899_vm11, %v738_v35, 0.0  ;;  %v755_v38 = vsel %vm1961_vm14, %v739_v13, 0.0  ;;  %v701_v12 = vadd.f32 %v695_v48, %v575_v51 }
 0x18b   : > { %v702_v22 = vadd.f32 %v696_v56, %v576_v60  ;;  %v864_v45 = vsel %vm1965_vm15, %v850_v0, 0.0  ;;  %v865_v43 = vsel %vm1976_vm0, %v851_v7, 0.0  ;;  %v813_v39 = vadd.f32 %v797_v44, %v650_v42  ;;  %v2205_v0 = vld [vmem:[#allocation7_spill] sm:$0xff]  ;;  %v2206_v7 = vld [vmem:[#allocation12_spill] sm:$0xff] }
 0x18c   : > { %v706_v61 = vpop.permute.xlu1 %705  ;;  %v814_v62 = vadd.f32 %v808_v33, %v1875_v19  ;;  %v760_v16 = vadd.f32 %v754_v29, %v626_v55  ;;  %v761_v58 = vadd.f32 %v755_v38, %v627_v57  ;;  %v870_v60 = vadd.f32 %v864_v45, %v701_v12  ;;  %v2207_v56 = vld [vmem:[#allocation8_spill] sm:$0xff] }
 0x18d   : > { %v717_v63 = vsel %vm715_vm4, %v706_v61, %v1727_v32  ;;  %v720_v1 = vsel %vm715_vm4, %v1727_v32, %v706_v61  ;;  %v871_v4 = vadd.f32 %v865_v43, %v702_v22  ;;  %v506_v52 = vmul.f32 %v2202_v59, %v1707_v5 }
 0x18e   : > { %v728_v49 = vpop.permute.xlu2 %727  ;;  %v2005_v36 = vpop.permute.xlu0 %823  ;;  %v876_v31 = vadd.f32 %v813_v39, %v760_v16  ;;  %v877_v17 = vadd.f32 %v814_v62, %v761_v58  ;;  %vm924_vm8 = vcmask 1043456   ;;  %v507_v35 = vmul.f32 %v2202_v59, %v2203_v54  ;;  %v2208_v39 = vld [vmem:[#allocation18_spill] sm:$0xff]  ;;  %v2209_v62 = vld [vmem:[#allocation15_spill] sm:$0xff] }
 0x18f   : > { %v736_v10 = vmul.f32 %v728_v49, %v717_v63  ;;  %v737_v46 = vmul.f32 %v728_v49, %v720_v1  ;;  %v642_v48 = vmul.f32 %v2206_v7, %v2205_v0  ;;  %v643_v44 = vmul.f32 %v2206_v7, %v2207_v56  ;;  %v2215_v59 = vld [vmem:[#allocation11_spill] sm:$0xff] }
 0x190   : > { %v882_v19 = vadd.f32 %v876_v31, %v870_v60  ;;  %v883_v18 = vadd.f32 %v877_v17, %v871_v4  ;;  %v2212_v17 = vld [vmem:[#allocation13_spill] sm:$0xff]  ;;  %vm920_vm13 = vcmask 195584  }
 0x191   : > { %v752_v32 = vsel %vm1899_vm11, %v736_v10, 0.0  ;;  %v753_v51 = vsel %vm1961_vm14, %v737_v46, 0.0  ;;  %v649_v1 = vadd.f32 %v643_v44, %v507_v35  ;;  %v719_v10 = vsel %vm715_vm4, %v2208_v39, %v2209_v62 }
 0x192   : > { %v758_v28 = vadd.f32 %v752_v32, %v1686_v47  ;;  %v759_v6 = vadd.f32 %v753_v51, %v1688_v23  ;;  %v516_v47 = vsel %vm2204_vm9, %v506_v52, 0.0  ;;  %v2210_v32 = vld [vmem:[#allocation14_spill] sm:$0xff] }
 0x193   : > { %v648_v29 = vadd.f32 %v642_v48, %v516_v47  ;;  %v2211_v51 = vld [vmem:[#allocation10_spill] sm:$0xff] }
 0x194   : > { %v763_v37 = vpop.permute.xlu1 %762  ;;  %v504_v60 = vmul.f32 %v2211_v51, %v2210_v32 }
 0x196   : > { %v897_v3 = vpop.permute.xlu0 %896 }
 0x197   : > { %v903_v14 = vadd.f32 %v897_v3, %v882_v19  ;;  %v904_v11 = vadd.f32 %v897_v3, %v883_v18  ;;  %v787_v42 = vpop.permute.xlu2 %786  ;;  %v505_v19 = vmul.f32 %v2211_v51, %v2212_v17  ;;  %v514_v18 = vsel %vm2213_vm12, %v504_v60, 0.0  ;;  %v2214_v3 = vld [vmem:[#allocation5_spill] sm:$0xff]  ;;  %v958_v17 = vld.sshfl [vmem:[#allocation1] sm:$0xff pattern:$0x75316420] }
 0x198   : > { %v640_v52 = vmul.f32 %v2215_v59, %v2214_v3 }
 0x199   : > { %v909_v21 = vmax.f32 %v903_v14, 0.0  ;;  %v910_v15 = vmax.f32 %v904_v11, 0.0  ;;  %v2216_v11 = vld [vmem:[#allocation6_spill] sm:$0xff] }
 0x19a   : > { %v641_v40 = vmul.f32 %v2215_v59, %v2216_v11 }
 0x19b   : > { %v913_v23 = vpack.c.bf16 %v909_v21, %v909_v21  ;;  %v914_v13 = vpack.c.bf16 %v910_v15, %v910_v15  ;;  %v2217_v21 = vld [vmem:[#allocation17_spill] sm:$0xff]  ;;  %v646_v15 = vadd.f32 %v640_v52, %v514_v18 }
 0x19c   : > { %v771_v5 = vpop.permute.xlu1 %770  ;;  %v775_v20 = vsel %vm774_vm6, %v763_v37, %v2217_v21  ;;  %v647_v47 = vadd.f32 %v641_v40, %v505_v19 }
 0x19d   : > { %v776_v55 = vsel %vm774_vm6, %v1852_v25, %v771_v5  ;;  %v779_v57 = vsel %vm774_vm6, %v771_v5, %v1852_v25  ;;  %v926_v33 = vsel %vm924_vm8, %v913_v23, 0  ;;  %v929_v61 = vsel %vm924_vm8, %v914_v13, 0 }
 0x19e   : > { %v795_v38 = vmul.f32 %v787_v42, %v776_v55  ;;  %v796_v63 = vmul.f32 %v787_v42, %v779_v57  ;;  %937 = vmatpush.bf16.msra.mxu2 %v926_v33  ;;  %950 = vmatpush.bf16.msra.mxu3 %v929_v61  ;;  %v716_v25 = vsel %vm715_vm4, %v2209_v62, %v2208_v39 }
 0x19f   : > { %v822_v14 = vpop.permute.xlu2 %821 }
 0x1a0   : > { %v806_v12 = vsel %vm741_vm2, %v796_v63, 0.0  ;;  %v811_v22 = vadd.f32 %v795_v38, %v648_v29  ;;  %v828_v63 = vsel %vm827_vm7, %v1929_v26, %v822_v14 }
 0x1a1   : > { %v812_v45 = vadd.f32 %v806_v12, %v649_v1 }
 0x1a2   : > { %v874_v43 = vadd.f32 %v811_v22, %v758_v28 }
 0x1a3   : > { %v875_v49 = vadd.f32 %v812_v45, %v759_v6 }
 0x1a4   : > { %v724_v46 = vpop.permute.xlu1 %723 }
 0x1a5   : > { %v734_v16 = vmul.f32 %v724_v46, %v716_v25  ;;  %v735_v58 = vmul.f32 %v724_v46, %v719_v10 }
 0x1a7   : > { %v750_v4 = vsel %vm1899_vm11, %v734_v16, 0.0  ;;  %v751_v28 = vsel %vm1961_vm14, %v735_v58, 0.0  ;;  %v840_v56 = vpop.permute.xlu2 %839 }
 0x1a8   : > { %v756_v6 = vadd.f32 %v750_v4, %v1888_v53  ;;  %v757_v31 = vadd.f32 %v751_v28, %v1890_v41  ;;  %v778_v53 = vsel %vm774_vm6, %v2217_v21, %v763_v37  ;;  %v959_v28 = vld.sshfl [vmem:[#allocation1 + $0x8] sm:$0xff pattern:$0x75316420] }
 0x1ad   : > { %v783_v41 = vpop.permute.xlu1 %782 }
 0x1ae   : > { %v793_v54 = vmul.f32 %v783_v41, %v775_v20  ;;  %v794_v35 = vmul.f32 %v783_v41, %v778_v53 }
 0x1b0   : > { %v804_v23 = vsel %vm741_vm2, %v794_v35, 0.0  ;;  %v809_v13 = vadd.f32 %v793_v54, %v646_v15 }
 0x1b1   : > { %v810_v0 = vadd.f32 %v804_v23, %v647_v47 }
 0x1b2   : > { %v872_v7 = vadd.f32 %v809_v13, %v756_v6 }
 0x1b3   : > { %v873_v48 = vadd.f32 %v810_v0, %v757_v31 }
 0x1b5   : > { %v818_v44 = vpop.permute.xlu1 %817 }
 0x1b6   : > { %v829_v5 = vsel %vm827_vm7, %v818_v44, %v2005_v36  ;;  %v832_v37 = vsel %vm827_vm7, %v2005_v36, %v818_v44  ;;  %v831_v36 = vsel %vm827_vm7, %v822_v14, %v1929_v26 }
 0x1b7   : > { %v848_v42 = vmul.f32 %v840_v56, %v829_v5  ;;  %v849_v55 = vmul.f32 %v840_v56, %v832_v37 }
 0x1b9   : > { %v862_v2 = vsel %vm1965_vm15, %v848_v42, 0.0  ;;  %v863_v57 = vsel %vm1976_vm0, %v849_v55, 0.0 }
 0x1ba   : > { %v868_v33 = vadd.f32 %v862_v2, %v1805_v50  ;;  %v869_v61 = vadd.f32 %v863_v57, %v1807_v34 }
 0x1bc   : > { %v880_v29 = vadd.f32 %v874_v43, %v868_v33  ;;  %v881_v38 = vadd.f32 %v875_v49, %v869_v61  ;;  %v892_v49 = vpop.permute.xlu2 %891 }
 0x1bd   : > { %v836_v1 = vpop.permute.xlu1 %835 }
 0x1be   : > { %v846_v12 = vmul.f32 %v836_v1, %v828_v63  ;;  %v847_v22 = vmul.f32 %v836_v1, %v831_v36  ;;  %v901_v25 = vadd.f32 %v892_v49, %v880_v29  ;;  %v902_v10 = vadd.f32 %v892_v49, %v881_v38 }
 0x1c0   : > { %v860_v45 = vsel %vm1965_vm15, %v846_v12, 0.0  ;;  %v861_v50 = vsel %vm1976_vm0, %v847_v22, 0.0  ;;  %v907_v16 = vmax.f32 %v901_v25, 0.0  ;;  %v908_v8 = vmax.f32 %v902_v10, 0.0 }
 0x1c1   : > { %v866_v34 = vadd.f32 %v860_v45, %v1953_v30  ;;  %v867_v43 = vadd.f32 %v861_v50, %v1959_v24  ;;  %v315_v30 = vld [vmem:[%s2132_s6] sm:$0x3] }
 0x1c3   : > { %v879_v39 = vadd.f32 %v873_v48, %v867_v43  ;;  %v878_v62 = vadd.f32 %v872_v7, %v866_v34 }
 0x1c6   : > { %v887_v9 = vpop.permute.xlu1 %886 }
 0x1c7   : > { %v899_v26 = vadd.f32 %v887_v9, %v878_v62  ;;  %v900_v46 = vadd.f32 %v887_v9, %v879_v39 }
 0x1c9   : > { %v905_v58 = vmax.f32 %v899_v26, 0.0  ;;  %v906_v32 = vmax.f32 %v900_v46, 0.0 }
 0x1cb   : > { %v911_v27 = vpack.c.bf16 %v907_v16, %v905_v58  ;;  %v912_v51 = vpack.c.bf16 %v908_v8, %v906_v32 }
 0x1cd   : > { %938 = vmatpush.bf16.msra.mxu2 %v911_v27  ;;  %951 = vmatpush.bf16.msra.mxu3 %v912_v51 }
 0x1ce   : > { %v918_v24 = vpop.permute.xlu1 %917 }
 0x1d0   : > { %1061 = vmatmul.msk.bf16.vlgmr.msra.gmra.mxu2 %vm920_vm13, %v315_v30  ;;  %1062 = vmatmul.msk.bf16.vlgmr.msra.gmra.mxu3 %vm920_vm13, %v315_v30 }
 0x253   : > { %v940_v60 = vpop.f32.mrf.mxu2  ;;  %v953_v4 = vpop.f32.mrf.mxu3 }
 0x254   : > { %v941_v6 = vadd.f32 %v940_v60, %v918_v24  ;;  %v954_v31 = vadd.f32 %v953_v4, %v918_v24 }
 0x256   : > { %v963_v19 = vadd.f32 %v959_v28, %v954_v31  ;;  %v962_v18 = vadd.f32 %v958_v17, %v941_v6 }
 0x258   : > { %v966_v3 = vrot.slane %v963_v19, 4 }
 0x25a   : > { %v967_v59 = vsel %vm924_vm8, %v962_v18, %v966_v3 }
 0x25b   : > { %v942_v52 = vpop.f32.mrf.mxu2  ;;  %v955_v14 = vpop.f32.mrf.mxu3  ;;  %969 = vst [vmem:[%s298_s25] sm:$0xff] %v967_v59 }
 0x25c   : > { %1184 = shalt.err (!%p1181_p3)
}
 0x25d   : > { %1071 = dma.vmem_to_hbm [thread:$0]  (%p1321_p5), %s985_s26, 128, %s987_s10, %s971_s9  }
 0x25e PF: > { %p1077_p4 = scmp.ge.s32.totalorder %s1219_s30, 2  ;;  %s998_s19 = sand.u32 1, %s1207_s27  }
 0x25f   : > { %s999_s23 = scalar_lea.sflag [#allocation3], %s998_s19 }
 0x260   : > { %p1074_p7 = pnand %p1077_p4, %p1325_p6 }
 0x262   : > { %p1075_p8 = pneg %p1074_p7 }
 0x264   : > { %1202 = dma.done.wait (%p1075_p8), %s999_s23, 128  }
 0x265   : > { %1204 = vsyncadd (%p1075_p8), %s999_s23, 4294967168  ;;  %p18_p9 = scmp.ge.s32.totalorder %s1308_s11, 4   ;;  %s2218_s27 = smov %s1211_s28 }
 0x266   : > { %s2219_s28 = smov %s1215_s29  ;;  %s2220_s29 = smov %s1319_s14 }
 0x267   : > { %s2221_s30 = smov %s1308_s11  ;;  %20 = sbr.rel (!%p18_p9) target bundleno = 3 (0x3), region = 87 }
 0x26c   :  { %1005 = vsyncpa [#allocation3], 1 }
 0x26d   :  { %1007 = vsyncpa [#allocation3 + $0x1], 1 }

</bundles_post_ra>
